<compile_context>
chip_gen: v6e
topology: v6e:2x2x1
jax: 0.10.0
libtpu: 0.0.40
codegen_flags: <defaults>
</compile_context>

<pallas_src>
import functools
import math

import jax
import jax.numpy as jnp
from jax.experimental import pallas as pl
from jax.experimental.pallas import tpu as pltpu  # noqa: F401  (TPU backend assumed)

# ---------------- synthetic BERT config ----------------
VOCAB = 100
HIDDEN = 32
N_LAYERS = 2
N_HEADS = 4
HEAD_DIM = HIDDEN // N_HEADS
INTERMEDIATE = 64
MAX_POS = 16
LN_EPS = 1e-12


# ---------------- fused forward kernel ----------------
def _qe_fused_kernel(x_ref, bias_ref,
                     emb_g_ref, emb_b_ref,
                     wqkv_ref, bqkv_ref, wo_ref, bo_ref,
                     ln1_g_ref, ln1_b_ref,
                     w1_ref, b1_ref, w2_ref, b2_ref,
                     ln2_g_ref, ln2_b_ref,
                     pool_w_ref, pool_b_ref, reg_w_ref, reg_b_ref,
                     out_ref, *, n_layers, n_heads, head_dim, batch, seq):
    hidden = n_heads * head_dim

    def layer_norm(v, g, b):
        mean = jnp.mean(v, axis=-1, keepdims=True)
        var = jnp.mean((v - mean) ** 2, axis=-1, keepdims=True)
        return (v - mean) * jax.lax.rsqrt(var + LN_EPS) * g + b

    x = layer_norm(x_ref[...], emb_g_ref[...], emb_b_ref[...])        # (BS, H)
    bias = bias_ref[...]                                              # (BS, BS) additive

    for l in range(n_layers):                                         # static unroll
        # fused QKV projection: one (BS,H) @ (H,3H) MXU op
        # (attention scale 1/sqrt(Dh) already folded into the Q columns at pack time)
        qkv = jnp.dot(x, wqkv_ref[l], preferred_element_type=jnp.float32) + bqkv_ref[l]
        wo = wo_ref[l]                                                 # (H, H)

        attn = jnp.zeros((x.shape[0], hidden), jnp.float32)
        for h in range(n_heads):                                       # static unroll
            lo = h * head_dim
            q = qkv[:, lo:lo + head_dim]                               # (BS, Dh)
            k = qkv[:, hidden + lo:hidden + lo + head_dim]
            v = qkv[:, 2 * hidden + lo:2 * hidden + lo + head_dim]
            s = jnp.dot(q, k.T, preferred_element_type=jnp.float32) + bias
            s = s - jnp.max(s, axis=-1, keepdims=True)
            p = jnp.exp(s)
            p = p * pl.reciprocal(jnp.sum(p, axis=-1, keepdims=True), approx=True)
            ctx_h = jnp.dot(p, v, preferred_element_type=jnp.float32)  # (BS, Dh)
            # fold this head straight into the output projection (no concat/reassembly)
            attn = attn + jnp.dot(ctx_h, wo[lo:lo + head_dim, :],
                                  preferred_element_type=jnp.float32)
        attn = attn + bo_ref[l]
        x = layer_norm(x + attn, ln1_g_ref[l], ln1_b_ref[l])

        hmid = jnp.dot(x, w1_ref[l], preferred_element_type=jnp.float32) + b1_ref[l]
        hmid = 0.5 * hmid * (1.0 + jax.lax.erf(hmid * (1.0 / math.sqrt(2.0))))  # exact GELU
        ffn = jnp.dot(hmid, w2_ref[l], preferred_element_type=jnp.float32) + b2_ref[l]
        x = layer_norm(x + ffn, ln2_g_ref[l], ln2_b_ref[l])

    # pooler (dense + tanh) + regressor on the [CLS] rows only (rows b*seq; seq==8 so
    # the slices are sublane-tile aligned).  Output is exactly the model output (B, 1).
    cls = jnp.concatenate([x[b * seq:b * seq + 1, :] for b in range(batch)], axis=0)
    pooled = jnp.tanh(jnp.dot(cls, pool_w_ref[...], preferred_element_type=jnp.float32)
                      + pool_b_ref[...])
    score = jnp.dot(pooled, reg_w_ref[...], preferred_element_type=jnp.float32) + reg_b_ref[...]
    out_ref[...] = score.astype(out_ref.dtype)


# ---------------- parameter init (deterministic, synthetic) ----------------
def init_params(key):
    def nrm(k, shape):
        return 0.02 * jax.random.normal(k, shape, dtype=jnp.float32)

    keys = iter(jax.random.split(key, 64))
    params = {
        "word_emb": nrm(next(keys), (VOCAB, HIDDEN)),
        "pos_emb": nrm(next(keys), (MAX_POS, HIDDEN)),
        "type_emb": nrm(next(keys), (2, HIDDEN)),
        "emb_ln_g": jnp.ones((HIDDEN,), jnp.float32),
        "emb_ln_b": jnp.zeros((HIDDEN,), jnp.float32),
        "layers": [],
        "pool_w": nrm(next(keys), (HIDDEN, HIDDEN)),
        "pool_b": jnp.zeros((HIDDEN,), jnp.float32),
        "reg_w": nrm(next(keys), (HIDDEN, 1)),
        "reg_b": jnp.zeros((1,), jnp.float32),
    }
    for _ in range(N_LAYERS):
        layer = {
            "wq": nrm(next(keys), (HIDDEN, HIDDEN)), "bq": jnp.zeros((HIDDEN,), jnp.float32),
            "wk": nrm(next(keys), (HIDDEN, HIDDEN)), "bk": jnp.zeros((HIDDEN,), jnp.float32),
            "wv": nrm(next(keys), (HIDDEN, HIDDEN)), "bv": jnp.zeros((HIDDEN,), jnp.float32),
            "wo": nrm(next(keys), (HIDDEN, HIDDEN)), "bo": jnp.zeros((HIDDEN,), jnp.float32),
            "ln1_g": jnp.ones((HIDDEN,), jnp.float32), "ln1_b": jnp.zeros((HIDDEN,), jnp.float32),
            "w1": nrm(next(keys), (HIDDEN, INTERMEDIATE)), "b1": jnp.zeros((INTERMEDIATE,), jnp.float32),
            "w2": nrm(next(keys), (INTERMEDIATE, HIDDEN)), "b2": jnp.zeros((HIDDEN,), jnp.float32),
            "ln2_g": jnp.ones((HIDDEN,), jnp.float32), "ln2_b": jnp.zeros((HIDDEN,), jnp.float32),
        }
        params["layers"].append(layer)
    return params


def pack_params(params):
    """One-time packing: fold attn scale into Wq/bq, fuse Q|K|V, stack per-layer, 2D biases."""
    layers = params["layers"]
    scale = 1.0 / math.sqrt(HEAD_DIM)

    def stack2d(name, width):
        return jnp.stack([l[name].reshape(1, width) for l in layers], axis=0)

    packed = {
        "word_emb": params["word_emb"],
        "pos_emb": params["pos_emb"],
        "type_emb": params["type_emb"],
        "emb_ln_g": params["emb_ln_g"].reshape(1, HIDDEN),
        "emb_ln_b": params["emb_ln_b"].reshape(1, HIDDEN),
        "wqkv": jnp.stack([jnp.concatenate([l["wq"] * scale, l["wk"], l["wv"]], axis=1)
                           for l in layers], axis=0),                       # (L, H, 3H)
        "bqkv": jnp.stack([jnp.concatenate([l["bq"] * scale, l["bk"], l["bv"]], axis=0)
                           .reshape(1, 3 * HIDDEN) for l in layers], axis=0),  # (L, 1, 3H)
        "wo": jnp.stack([l["wo"] for l in layers], axis=0),                 # (L, H, H)
        "bo": stack2d("bo", HIDDEN),
        "ln1_g": stack2d("ln1_g", HIDDEN), "ln1_b": stack2d("ln1_b", HIDDEN),
        "w1": jnp.stack([l["w1"] for l in layers], axis=0),                 # (L, H, I)
        "b1": stack2d("b1", INTERMEDIATE),
        "w2": jnp.stack([l["w2"] for l in layers], axis=0),                 # (L, I, H)
        "b2": stack2d("b2", HIDDEN),
        "ln2_g": stack2d("ln2_g", HIDDEN), "ln2_b": stack2d("ln2_b", HIDDEN),
        "pool_w": params["pool_w"],
        "pool_b": params["pool_b"].reshape(1, HIDDEN),
        "reg_w": params["reg_w"],
        "reg_b": params["reg_b"].reshape(1, 1),
    }
    return packed


# ---------------- forward pass (embedding gather in JAX glue, rest in one kernel) ----------------
def qe_model_forward(packed, input_ids, attention_mask):
    B, S = input_ids.shape
    BS = B * S

    # embeddings (data-dependent gather stays in XLA glue)
    we = jnp.take(packed["word_emb"], input_ids, axis=0)               # (B, S, H)
    pe = packed["pos_emb"][:S][None, :, :]
    te = packed["type_emb"][0][None, None, :]                          # token_type_ids = 0
    x_emb = (we + pe + te).reshape(BS, HIDDEN).astype(jnp.float32)

    # Combined additive attention bias, shared by all heads and layers:
    #   key-padding bias (-10000, as in BERT) + block-diagonal batch mask (-1e9 cross-batch).
    pad_bias = ((1.0 - attention_mask.astype(jnp.float32)) * -10000.0).reshape(1, BS)
    batch_ids = jnp.repeat(jnp.arange(B, dtype=jnp.int32), S)
    same_batch = batch_ids[:, None] == batch_ids[None, :]
    bias_full = jnp.where(same_batch, 0.0, -1e9).astype(jnp.float32) + pad_bias  # (BS, BS)

    inputs = [
        x_emb, bias_full,
        packed["emb_ln_g"], packed["emb_ln_b"],
        packed["wqkv"], packed["bqkv"], packed["wo"], packed["bo"],
        packed["ln1_g"], packed["ln1_b"],
        packed["w1"], packed["b1"], packed["w2"], packed["b2"],
        packed["ln2_g"], packed["ln2_b"],
        packed["pool_w"], packed["pool_b"], packed["reg_w"], packed["reg_b"],
    ]

    def whole_block(a):
        nd = a.ndim
        return pl.BlockSpec(a.shape, lambda *_: (0,) * nd)

    kernel = functools.partial(
        _qe_fused_kernel,
        n_layers=N_LAYERS, n_heads=N_HEADS, head_dim=HEAD_DIM, batch=B, seq=S)

    # single invocation (no grid): all operands are whole-array VMEM blocks
    score = pl.pallas_call(
        kernel,
        out_shape=jax.ShapeDtypeStruct((B, 1), jnp.float32),
        in_specs=[whole_block(a) for a in inputs],
        out_specs=pl.BlockSpec((B, 1), lambda *_: (0, 0)),
    )(*inputs)
    return score                                                       # (B, 1)


if __name__ == "__main__":
    key = jax.random.PRNGKey(0)
    k_params, k_ids = jax.random.split(key)

    B, S = 2, 8
    params = init_params(k_params)
    packed = pack_params(params)

    input_ids = jax.random.randint(k_ids, (B, S), 0, VOCAB, dtype=jnp.int32)
    # simple padding mask: last 2 tokens of the second sequence are padding
    attention_mask = jnp.array([[1] * S, [1] * (S - 2) + [0] * 2], dtype=jnp.int32)

    fwd = jax.jit(qe_model_forward)
    score = fwd(packed, input_ids, attention_mask)
    score = jax.block_until_ready(score)
    assert score.shape == (B, 1)
    print("KERNEL_OK")
</pallas_src>

<mosaic_0001>
module attributes {stable_mosaic.version = 11 : i64} {
  func.func @_qe_fused_kernel(%arg0: memref<16x32xf32, #tpu.memory_space<vmem>>, %arg1: memref<16x16xf32, #tpu.memory_space<vmem>>, %arg2: memref<1x32xf32, #tpu.memory_space<vmem>>, %arg3: memref<1x32xf32, #tpu.memory_space<vmem>>, %arg4: memref<2x32x96xf32, #tpu.memory_space<vmem>>, %arg5: memref<2x1x96xf32, #tpu.memory_space<vmem>>, %arg6: memref<2x32x32xf32, #tpu.memory_space<vmem>>, %arg7: memref<2x1x32xf32, #tpu.memory_space<vmem>>, %arg8: memref<2x1x32xf32, #tpu.memory_space<vmem>>, %arg9: memref<2x1x32xf32, #tpu.memory_space<vmem>>, %arg10: memref<2x32x64xf32, #tpu.memory_space<vmem>>, %arg11: memref<2x1x64xf32, #tpu.memory_space<vmem>>, %arg12: memref<2x64x32xf32, #tpu.memory_space<vmem>>, %arg13: memref<2x1x32xf32, #tpu.memory_space<vmem>>, %arg14: memref<2x1x32xf32, #tpu.memory_space<vmem>>, %arg15: memref<2x1x32xf32, #tpu.memory_space<vmem>>, %arg16: memref<32x32xf32, #tpu.memory_space<vmem>>, %arg17: memref<1x32xf32, #tpu.memory_space<vmem>>, %arg18: memref<32x1xf32, #tpu.memory_space<vmem>>, %arg19: memref<1x1xf32, #tpu.memory_space<vmem>>, %arg20: memref<2x1xf32, #tpu.memory_space<vmem>>) attributes {dimension_semantics = [], scalar_prefetch = 0 : i64, scratch_operands = 0 : i64, tpu.core_type = #tpu.core_type<tc>} {
    %c0 = arith.constant 0 : index
    %c0_0 = arith.constant 0 : index
    %0 = vector.load %arg0[%c0, %c0_0] : memref<16x32xf32, #tpu.memory_space<vmem>>, vector<16x32xf32>
    %c0_1 = arith.constant 0 : index
    %c0_2 = arith.constant 0 : index
    %1 = vector.load %arg2[%c0_1, %c0_2] : memref<1x32xf32, #tpu.memory_space<vmem>>, vector<1x32xf32>
    %c0_3 = arith.constant 0 : index
    %c0_4 = arith.constant 0 : index
    %2 = vector.load %arg3[%c0_3, %c0_4] : memref<1x32xf32, #tpu.memory_space<vmem>>, vector<1x32xf32>
    %cst = arith.constant dense<0.000000e+00> : vector<16xf32>
    %3 = vector.multi_reduction <add>, %0, %cst [1] : vector<16x32xf32> to vector<16xf32>
    %4 = vector.shape_cast %3 : vector<16xf32> to vector<16x1xf32>
    %cst_5 = arith.constant 3.200000e+01 : f32
    %5 = vector.broadcast %cst_5 : f32 to vector<16x1xf32>
    %6 = arith.divf %4, %5 : vector<16x1xf32>
    %7 = vector.broadcast %6 : vector<16x1xf32> to vector<16x32xf32>
    %8 = arith.subf %0, %7 : vector<16x32xf32>
    %9 = arith.mulf %8, %8 : vector<16x32xf32>
    %cst_6 = arith.constant dense<0.000000e+00> : vector<16xf32>
    %10 = vector.multi_reduction <add>, %9, %cst_6 [1] : vector<16x32xf32> to vector<16xf32>
    %11 = vector.shape_cast %10 : vector<16xf32> to vector<16x1xf32>
    %cst_7 = arith.constant 3.200000e+01 : f32
    %12 = vector.broadcast %cst_7 : f32 to vector<16x1xf32>
    %13 = arith.divf %11, %12 : vector<16x1xf32>
    %14 = vector.broadcast %6 : vector<16x1xf32> to vector<16x32xf32>
    %15 = arith.subf %0, %14 : vector<16x32xf32>
    %cst_8 = arith.constant 9.99999996E-13 : f32
    %16 = vector.broadcast %cst_8 : f32 to vector<16x1xf32>
    %17 = arith.addf %13, %16 : vector<16x1xf32>
    %18 = math.rsqrt %17 : vector<16x1xf32>
    %19 = vector.broadcast %18 : vector<16x1xf32> to vector<16x32xf32>
    %20 = arith.mulf %15, %19 : vector<16x32xf32>
    %21 = vector.broadcast %1 : vector<1x32xf32> to vector<16x32xf32>
    %22 = arith.mulf %20, %21 : vector<16x32xf32>
    %23 = vector.broadcast %2 : vector<1x32xf32> to vector<16x32xf32>
    %24 = arith.addf %22, %23 : vector<16x32xf32>
    %c0_9 = arith.constant 0 : index
    %c0_10 = arith.constant 0 : index
    %25 = vector.load %arg1[%c0_9, %c0_10] : memref<16x16xf32, #tpu.memory_space<vmem>>, vector<16x16xf32>
    %c0_11 = arith.constant 0 : index
    %c0_12 = arith.constant 0 : index
    %c0_13 = arith.constant 0 : index
    %26 = vector.load %arg4[%c0_11, %c0_12, %c0_13] : memref<2x32x96xf32, #tpu.memory_space<vmem>>, vector<1x32x96xf32>
    %27 = vector.shape_cast %26 : vector<1x32x96xf32> to vector<32x96xf32>
    %cst_14 = arith.constant dense<0.000000e+00> : vector<16x96xf32>
    %28 = tpu.matmul %24, %27, %cst_14 {dimension_numbers = #tpu.dot_dimension_numbers<[1], [0], [0], [1], [0, 0, 1, 1], [], []>} : vector<16x32xf32>, vector<32x96xf32>, vector<16x96xf32> -> vector<16x96xf32>
    %c0_15 = arith.constant 0 : index
    %c0_16 = arith.constant 0 : index
    %c0_17 = arith.constant 0 : index
    %29 = vector.load %arg5[%c0_15, %c0_16, %c0_17] : memref<2x1x96xf32, #tpu.memory_space<vmem>>, vector<1x1x96xf32>
    %30 = vector.shape_cast %29 : vector<1x1x96xf32> to vector<1x96xf32>
    %31 = vector.broadcast %30 : vector<1x96xf32> to vector<16x96xf32>
    %32 = arith.addf %28, %31 : vector<16x96xf32>
    %c0_18 = arith.constant 0 : index
    %c0_19 = arith.constant 0 : index
    %c0_20 = arith.constant 0 : index
    %33 = vector.load %arg6[%c0_18, %c0_19, %c0_20] : memref<2x32x32xf32, #tpu.memory_space<vmem>>, vector<1x32x32xf32>
    %34 = vector.shape_cast %33 : vector<1x32x32xf32> to vector<32x32xf32>
    %cst_21 = arith.constant 0.000000e+00 : f32
    %35 = vector.broadcast %cst_21 : f32 to vector<16x32xf32>
    %36 = vector.extract_strided_slice %32 {offsets = [0, 0], sizes = [16, 8], strides = [1, 1]} : vector<16x96xf32> to vector<16x8xf32>
    %37 = vector.extract_strided_slice %32 {offsets = [0, 32], sizes = [16, 8], strides = [1, 1]} : vector<16x96xf32> to vector<16x8xf32>
    %38 = vector.extract_strided_slice %32 {offsets = [0, 64], sizes = [16, 8], strides = [1, 1]} : vector<16x96xf32> to vector<16x8xf32>
    %39 = tpu.transpose %37, [1, 0] : vector<16x8xf32> -> vector<8x16xf32>
    %cst_22 = arith.constant dense<0.000000e+00> : vector<16x16xf32>
    %40 = tpu.matmul %36, %39, %cst_22 {dimension_numbers = #tpu.dot_dimension_numbers<[1], [0], [0], [1], [0, 0, 1, 1], [], []>} : vector<16x8xf32>, vector<8x16xf32>, vector<16x16xf32> -> vector<16x16xf32>
    %41 = arith.addf %40, %25 : vector<16x16xf32>
    %cst_23 = arith.constant dense<0xFF800000> : vector<16xf32>
    %42 = vector.multi_reduction <maximumf>, %41, %cst_23 [1] : vector<16x16xf32> to vector<16xf32>
    %43 = vector.shape_cast %42 : vector<16xf32> to vector<16x1xf32>
    %44 = vector.broadcast %43 : vector<16x1xf32> to vector<16x16xf32>
    %45 = arith.subf %41, %44 : vector<16x16xf32>
    %46 = math.exp %45 : vector<16x16xf32>
    %cst_24 = arith.constant dense<0.000000e+00> : vector<16xf32>
    %47 = vector.multi_reduction <add>, %46, %cst_24 [1] : vector<16x16xf32> to vector<16xf32>
    %48 = vector.shape_cast %47 : vector<16xf32> to vector<16x1xf32>
    %49 = tpu.reciprocal %48 {approx = true} : vector<16x1xf32> -> vector<16x1xf32>
    %50 = vector.broadcast %49 : vector<16x1xf32> to vector<16x16xf32>
    %51 = arith.mulf %46, %50 : vector<16x16xf32>
    %cst_25 = arith.constant dense<0.000000e+00> : vector<16x8xf32>
    %52 = tpu.matmul %51, %38, %cst_25 {dimension_numbers = #tpu.dot_dimension_numbers<[1], [0], [0], [1], [0, 0, 1, 1], [], []>} : vector<16x16xf32>, vector<16x8xf32>, vector<16x8xf32> -> vector<16x8xf32>
    %53 = vector.extract_strided_slice %34 {offsets = [0, 0], sizes = [8, 32], strides = [1, 1]} : vector<32x32xf32> to vector<8x32xf32>
    %cst_26 = arith.constant dense<0.000000e+00> : vector<16x32xf32>
    %54 = tpu.matmul %52, %53, %cst_26 {dimension_numbers = #tpu.dot_dimension_numbers<[1], [0], [0], [1], [0, 0, 1, 1], [], []>} : vector<16x8xf32>, vector<8x32xf32>, vector<16x32xf32> -> vector<16x32xf32>
    %55 = arith.addf %35, %54 : vector<16x32xf32>
    %56 = vector.extract_strided_slice %32 {offsets = [0, 8], sizes = [16, 8], strides = [1, 1]} : vector<16x96xf32> to vector<16x8xf32>
    %57 = vector.extract_strided_slice %32 {offsets = [0, 40], sizes = [16, 8], strides = [1, 1]} : vector<16x96xf32> to vector<16x8xf32>
    %58 = vector.extract_strided_slice %32 {offsets = [0, 72], sizes = [16, 8], strides = [1, 1]} : vector<16x96xf32> to vector<16x8xf32>
    %59 = tpu.transpose %57, [1, 0] : vector<16x8xf32> -> vector<8x16xf32>
    %cst_27 = arith.constant dense<0.000000e+00> : vector<16x16xf32>
    %60 = tpu.matmul %56, %59, %cst_27 {dimension_numbers = #tpu.dot_dimension_numbers<[1], [0], [0], [1], [0, 0, 1, 1], [], []>} : vector<16x8xf32>, vector<8x16xf32>, vector<16x16xf32> -> vector<16x16xf32>
    %61 = arith.addf %60, %25 : vector<16x16xf32>
    %cst_28 = arith.constant dense<0xFF800000> : vector<16xf32>
    %62 = vector.multi_reduction <maximumf>, %61, %cst_28 [1] : vector<16x16xf32> to vector<16xf32>
    %63 = vector.shape_cast %62 : vector<16xf32> to vector<16x1xf32>
    %64 = vector.broadcast %63 : vector<16x1xf32> to vector<16x16xf32>
    %65 = arith.subf %61, %64 : vector<16x16xf32>
    %66 = math.exp %65 : vector<16x16xf32>
    %cst_29 = arith.constant dense<0.000000e+00> : vector<16xf32>
    %67 = vector.multi_reduction <add>, %66, %cst_29 [1] : vector<16x16xf32> to vector<16xf32>
    %68 = vector.shape_cast %67 : vector<16xf32> to vector<16x1xf32>
    %69 = tpu.reciprocal %68 {approx = true} : vector<16x1xf32> -> vector<16x1xf32>
    %70 = vector.broadcast %69 : vector<16x1xf32> to vector<16x16xf32>
    %71 = arith.mulf %66, %70 : vector<16x16xf32>
    %cst_30 = arith.constant dense<0.000000e+00> : vector<16x8xf32>
    %72 = tpu.matmul %71, %58, %cst_30 {dimension_numbers = #tpu.dot_dimension_numbers<[1], [0], [0], [1], [0, 0, 1, 1], [], []>} : vector<16x16xf32>, vector<16x8xf32>, vector<16x8xf32> -> vector<16x8xf32>
    %73 = vector.extract_strided_slice %34 {offsets = [8, 0], sizes = [8, 32], strides = [1, 1]} : vector<32x32xf32> to vector<8x32xf32>
    %cst_31 = arith.constant dense<0.000000e+00> : vector<16x32xf32>
    %74 = tpu.matmul %72, %73, %cst_31 {dimension_numbers = #tpu.dot_dimension_numbers<[1], [0], [0], [1], [0, 0, 1, 1], [], []>} : vector<16x8xf32>, vector<8x32xf32>, vector<16x32xf32> -> vector<16x32xf32>
    %75 = arith.addf %55, %74 : vector<16x32xf32>
    %76 = vector.extract_strided_slice %32 {offsets = [0, 16], sizes = [16, 8], strides = [1, 1]} : vector<16x96xf32> to vector<16x8xf32>
    %77 = vector.extract_strided_slice %32 {offsets = [0, 48], sizes = [16, 8], strides = [1, 1]} : vector<16x96xf32> to vector<16x8xf32>
    %78 = vector.extract_strided_slice %32 {offsets = [0, 80], sizes = [16, 8], strides = [1, 1]} : vector<16x96xf32> to vector<16x8xf32>
    %79 = tpu.transpose %77, [1, 0] : vector<16x8xf32> -> vector<8x16xf32>
    %cst_32 = arith.constant dense<0.000000e+00> : vector<16x16xf32>
    %80 = tpu.matmul %76, %79, %cst_32 {dimension_numbers = #tpu.dot_dimension_numbers<[1], [0], [0], [1], [0, 0, 1, 1], [], []>} : vector<16x8xf32>, vector<8x16xf32>, vector<16x16xf32> -> vector<16x16xf32>
    %81 = arith.addf %80, %25 : vector<16x16xf32>
    %cst_33 = arith.constant dense<0xFF800000> : vector<16xf32>
    %82 = vector.multi_reduction <maximumf>, %81, %cst_33 [1] : vector<16x16xf32> to vector<16xf32>
    %83 = vector.shape_cast %82 : vector<16xf32> to vector<16x1xf32>
    %84 = vector.broadcast %83 : vector<16x1xf32> to vector<16x16xf32>
    %85 = arith.subf %81, %84 : vector<16x16xf32>
    %86 = math.exp %85 : vector<16x16xf32>
    %cst_34 = arith.constant dense<0.000000e+00> : vector<16xf32>
    %87 = vector.multi_reduction <add>, %86, %cst_34 [1] : vector<16x16xf32> to vector<16xf32>
    %88 = vector.shape_cast %87 : vector<16xf32> to vector<16x1xf32>
    %89 = tpu.reciprocal %88 {approx = true} : vector<16x1xf32> -> vector<16x1xf32>
    %90 = vector.broadcast %89 : vector<16x1xf32> to vector<16x16xf32>
    %91 = arith.mulf %86, %90 : vector<16x16xf32>
    %cst_35 = arith.constant dense<0.000000e+00> : vector<16x8xf32>
    %92 = tpu.matmul %91, %78, %cst_35 {dimension_numbers = #tpu.dot_dimension_numbers<[1], [0], [0], [1], [0, 0, 1, 1], [], []>} : vector<16x16xf32>, vector<16x8xf32>, vector<16x8xf32> -> vector<16x8xf32>
    %93 = vector.extract_strided_slice %34 {offsets = [16, 0], sizes = [8, 32], strides = [1, 1]} : vector<32x32xf32> to vector<8x32xf32>
    %cst_36 = arith.constant dense<0.000000e+00> : vector<16x32xf32>
    %94 = tpu.matmul %92, %93, %cst_36 {dimension_numbers = #tpu.dot_dimension_numbers<[1], [0], [0], [1], [0, 0, 1, 1], [], []>} : vector<16x8xf32>, vector<8x32xf32>, vector<16x32xf32> -> vector<16x32xf32>
    %95 = arith.addf %75, %94 : vector<16x32xf32>
    %96 = vector.extract_strided_slice %32 {offsets = [0, 24], sizes = [16, 8], strides = [1, 1]} : vector<16x96xf32> to vector<16x8xf32>
    %97 = vector.extract_strided_slice %32 {offsets = [0, 56], sizes = [16, 8], strides = [1, 1]} : vector<16x96xf32> to vector<16x8xf32>
    %98 = vector.extract_strided_slice %32 {offsets = [0, 88], sizes = [16, 8], strides = [1, 1]} : vector<16x96xf32> to vector<16x8xf32>
    %99 = tpu.transpose %97, [1, 0] : vector<16x8xf32> -> vector<8x16xf32>
    %cst_37 = arith.constant dense<0.000000e+00> : vector<16x16xf32>
    %100 = tpu.matmul %96, %99, %cst_37 {dimension_numbers = #tpu.dot_dimension_numbers<[1], [0], [0], [1], [0, 0, 1, 1], [], []>} : vector<16x8xf32>, vector<8x16xf32>, vector<16x16xf32> -> vector<16x16xf32>
    %101 = arith.addf %100, %25 : vector<16x16xf32>
    %cst_38 = arith.constant dense<0xFF800000> : vector<16xf32>
    %102 = vector.multi_reduction <maximumf>, %101, %cst_38 [1] : vector<16x16xf32> to vector<16xf32>
    %103 = vector.shape_cast %102 : vector<16xf32> to vector<16x1xf32>
    %104 = vector.broadcast %103 : vector<16x1xf32> to vector<16x16xf32>
    %105 = arith.subf %101, %104 : vector<16x16xf32>
    %106 = math.exp %105 : vector<16x16xf32>
    %cst_39 = arith.constant dense<0.000000e+00> : vector<16xf32>
    %107 = vector.multi_reduction <add>, %106, %cst_39 [1] : vector<16x16xf32> to vector<16xf32>
    %108 = vector.shape_cast %107 : vector<16xf32> to vector<16x1xf32>
    %109 = tpu.reciprocal %108 {approx = true} : vector<16x1xf32> -> vector<16x1xf32>
    %110 = vector.broadcast %109 : vector<16x1xf32> to vector<16x16xf32>
    %111 = arith.mulf %106, %110 : vector<16x16xf32>
    %cst_40 = arith.constant dense<0.000000e+00> : vector<16x8xf32>
    %112 = tpu.matmul %111, %98, %cst_40 {dimension_numbers = #tpu.dot_dimension_numbers<[1], [0], [0], [1], [0, 0, 1, 1], [], []>} : vector<16x16xf32>, vector<16x8xf32>, vector<16x8xf32> -> vector<16x8xf32>
    %113 = vector.extract_strided_slice %34 {offsets = [24, 0], sizes = [8, 32], strides = [1, 1]} : vector<32x32xf32> to vector<8x32xf32>
    %cst_41 = arith.constant dense<0.000000e+00> : vector<16x32xf32>
    %114 = tpu.matmul %112, %113, %cst_41 {dimension_numbers = #tpu.dot_dimension_numbers<[1], [0], [0], [1], [0, 0, 1, 1], [], []>} : vector<16x8xf32>, vector<8x32xf32>, vector<16x32xf32> -> vector<16x32xf32>
    %115 = arith.addf %95, %114 : vector<16x32xf32>
    %c0_42 = arith.constant 0 : index
    %c0_43 = arith.constant 0 : index
    %c0_44 = arith.constant 0 : index
    %116 = vector.load %arg7[%c0_42, %c0_43, %c0_44] : memref<2x1x32xf32, #tpu.memory_space<vmem>>, vector<1x1x32xf32>
    %117 = vector.shape_cast %116 : vector<1x1x32xf32> to vector<1x32xf32>
    %118 = vector.broadcast %117 : vector<1x32xf32> to vector<16x32xf32>
    %119 = arith.addf %115, %118 : vector<16x32xf32>
    %120 = arith.addf %24, %119 : vector<16x32xf32>
    %c0_45 = arith.constant 0 : index
    %c0_46 = arith.constant 0 : index
    %c0_47 = arith.constant 0 : index
    %121 = vector.load %arg8[%c0_45, %c0_46, %c0_47] : memref<2x1x32xf32, #tpu.memory_space<vmem>>, vector<1x1x32xf32>
    %122 = vector.shape_cast %121 : vector<1x1x32xf32> to vector<1x32xf32>
    %c0_48 = arith.constant 0 : index
    %c0_49 = arith.constant 0 : index
    %c0_50 = arith.constant 0 : index
    %123 = vector.load %arg9[%c0_48, %c0_49, %c0_50] : memref<2x1x32xf32, #tpu.memory_space<vmem>>, vector<1x1x32xf32>
    %124 = vector.shape_cast %123 : vector<1x1x32xf32> to vector<1x32xf32>
    %cst_51 = arith.constant dense<0.000000e+00> : vector<16xf32>
    %125 = vector.multi_reduction <add>, %120, %cst_51 [1] : vector<16x32xf32> to vector<16xf32>
    %126 = vector.shape_cast %125 : vector<16xf32> to vector<16x1xf32>
    %cst_52 = arith.constant 3.200000e+01 : f32
    %127 = vector.broadcast %cst_52 : f32 to vector<16x1xf32>
    %128 = arith.divf %126, %127 : vector<16x1xf32>
    %129 = vector.broadcast %128 : vector<16x1xf32> to vector<16x32xf32>
    %130 = arith.subf %120, %129 : vector<16x32xf32>
    %131 = arith.mulf %130, %130 : vector<16x32xf32>
    %cst_53 = arith.constant dense<0.000000e+00> : vector<16xf32>
    %132 = vector.multi_reduction <add>, %131, %cst_53 [1] : vector<16x32xf32> to vector<16xf32>
    %133 = vector.shape_cast %132 : vector<16xf32> to vector<16x1xf32>
    %cst_54 = arith.constant 3.200000e+01 : f32
    %134 = vector.broadcast %cst_54 : f32 to vector<16x1xf32>
    %135 = arith.divf %133, %134 : vector<16x1xf32>
    %136 = vector.broadcast %128 : vector<16x1xf32> to vector<16x32xf32>
    %137 = arith.subf %120, %136 : vector<16x32xf32>
    %cst_55 = arith.constant 9.99999996E-13 : f32
    %138 = vector.broadcast %cst_55 : f32 to vector<16x1xf32>
    %139 = arith.addf %135, %138 : vector<16x1xf32>
    %140 = math.rsqrt %139 : vector<16x1xf32>
    %141 = vector.broadcast %140 : vector<16x1xf32> to vector<16x32xf32>
    %142 = arith.mulf %137, %141 : vector<16x32xf32>
    %143 = vector.broadcast %122 : vector<1x32xf32> to vector<16x32xf32>
    %144 = arith.mulf %142, %143 : vector<16x32xf32>
    %145 = vector.broadcast %124 : vector<1x32xf32> to vector<16x32xf32>
    %146 = arith.addf %144, %145 : vector<16x32xf32>
    %c0_56 = arith.constant 0 : index
    %c0_57 = arith.constant 0 : index
    %c0_58 = arith.constant 0 : index
    %147 = vector.load %arg10[%c0_56, %c0_57, %c0_58] : memref<2x32x64xf32, #tpu.memory_space<vmem>>, vector<1x32x64xf32>
    %148 = vector.shape_cast %147 : vector<1x32x64xf32> to vector<32x64xf32>
    %cst_59 = arith.constant dense<0.000000e+00> : vector<16x64xf32>
    %149 = tpu.matmul %146, %148, %cst_59 {dimension_numbers = #tpu.dot_dimension_numbers<[1], [0], [0], [1], [0, 0, 1, 1], [], []>} : vector<16x32xf32>, vector<32x64xf32>, vector<16x64xf32> -> vector<16x64xf32>
    %c0_60 = arith.constant 0 : index
    %c0_61 = arith.constant 0 : index
    %c0_62 = arith.constant 0 : index
    %150 = vector.load %arg11[%c0_60, %c0_61, %c0_62] : memref<2x1x64xf32, #tpu.memory_space<vmem>>, vector<1x1x64xf32>
    %151 = vector.shape_cast %150 : vector<1x1x64xf32> to vector<1x64xf32>
    %152 = vector.broadcast %151 : vector<1x64xf32> to vector<16x64xf32>
    %153 = arith.addf %149, %152 : vector<16x64xf32>
    %cst_63 = arith.constant 5.000000e-01 : f32
    %154 = vector.broadcast %cst_63 : f32 to vector<16x64xf32>
    %155 = arith.mulf %154, %153 : vector<16x64xf32>
    %cst_64 = arith.constant 0.707106769 : f32
    %156 = vector.broadcast %cst_64 : f32 to vector<16x64xf32>
    %157 = arith.mulf %153, %156 : vector<16x64xf32>
    %158 = math.erf %157 : vector<16x64xf32>
    %cst_65 = arith.constant 1.000000e+00 : f32
    %159 = vector.broadcast %cst_65 : f32 to vector<16x64xf32>
    %160 = arith.addf %159, %158 : vector<16x64xf32>
    %161 = arith.mulf %155, %160 : vector<16x64xf32>
    %c0_66 = arith.constant 0 : index
    %c0_67 = arith.constant 0 : index
    %c0_68 = arith.constant 0 : index
    %162 = vector.load %arg12[%c0_66, %c0_67, %c0_68] : memref<2x64x32xf32, #tpu.memory_space<vmem>>, vector<1x64x32xf32>
    %163 = vector.shape_cast %162 : vector<1x64x32xf32> to vector<64x32xf32>
    %cst_69 = arith.constant dense<0.000000e+00> : vector<16x32xf32>
    %164 = tpu.matmul %161, %163, %cst_69 {dimension_numbers = #tpu.dot_dimension_numbers<[1], [0], [0], [1], [0, 0, 1, 1], [], []>} : vector<16x64xf32>, vector<64x32xf32>, vector<16x32xf32> -> vector<16x32xf32>
    %c0_70 = arith.constant 0 : index
    %c0_71 = arith.constant 0 : index
    %c0_72 = arith.constant 0 : index
    %165 = vector.load %arg13[%c0_70, %c0_71, %c0_72] : memref<2x1x32xf32, #tpu.memory_space<vmem>>, vector<1x1x32xf32>
    %166 = vector.shape_cast %165 : vector<1x1x32xf32> to vector<1x32xf32>
    %167 = vector.broadcast %166 : vector<1x32xf32> to vector<16x32xf32>
    %168 = arith.addf %164, %167 : vector<16x32xf32>
    %169 = arith.addf %146, %168 : vector<16x32xf32>
    %c0_73 = arith.constant 0 : index
    %c0_74 = arith.constant 0 : index
    %c0_75 = arith.constant 0 : index
    %170 = vector.load %arg14[%c0_73, %c0_74, %c0_75] : memref<2x1x32xf32, #tpu.memory_space<vmem>>, vector<1x1x32xf32>
    %171 = vector.shape_cast %170 : vector<1x1x32xf32> to vector<1x32xf32>
    %c0_76 = arith.constant 0 : index
    %c0_77 = arith.constant 0 : index
    %c0_78 = arith.constant 0 : index
    %172 = vector.load %arg15[%c0_76, %c0_77, %c0_78] : memref<2x1x32xf32, #tpu.memory_space<vmem>>, vector<1x1x32xf32>
    %173 = vector.shape_cast %172 : vector<1x1x32xf32> to vector<1x32xf32>
    %cst_79 = arith.constant dense<0.000000e+00> : vector<16xf32>
    %174 = vector.multi_reduction <add>, %169, %cst_79 [1] : vector<16x32xf32> to vector<16xf32>
    %175 = vector.shape_cast %174 : vector<16xf32> to vector<16x1xf32>
    %cst_80 = arith.constant 3.200000e+01 : f32
    %176 = vector.broadcast %cst_80 : f32 to vector<16x1xf32>
    %177 = arith.divf %175, %176 : vector<16x1xf32>
    %178 = vector.broadcast %177 : vector<16x1xf32> to vector<16x32xf32>
    %179 = arith.subf %169, %178 : vector<16x32xf32>
    %180 = arith.mulf %179, %179 : vector<16x32xf32>
    %cst_81 = arith.constant dense<0.000000e+00> : vector<16xf32>
    %181 = vector.multi_reduction <add>, %180, %cst_81 [1] : vector<16x32xf32> to vector<16xf32>
    %182 = vector.shape_cast %181 : vector<16xf32> to vector<16x1xf32>
    %cst_82 = arith.constant 3.200000e+01 : f32
    %183 = vector.broadcast %cst_82 : f32 to vector<16x1xf32>
    %184 = arith.divf %182, %183 : vector<16x1xf32>
    %185 = vector.broadcast %177 : vector<16x1xf32> to vector<16x32xf32>
    %186 = arith.subf %169, %185 : vector<16x32xf32>
    %cst_83 = arith.constant 9.99999996E-13 : f32
    %187 = vector.broadcast %cst_83 : f32 to vector<16x1xf32>
    %188 = arith.addf %184, %187 : vector<16x1xf32>
    %189 = math.rsqrt %188 : vector<16x1xf32>
    %190 = vector.broadcast %189 : vector<16x1xf32> to vector<16x32xf32>
    %191 = arith.mulf %186, %190 : vector<16x32xf32>
    %192 = vector.broadcast %171 : vector<1x32xf32> to vector<16x32xf32>
    %193 = arith.mulf %191, %192 : vector<16x32xf32>
    %194 = vector.broadcast %173 : vector<1x32xf32> to vector<16x32xf32>
    %195 = arith.addf %193, %194 : vector<16x32xf32>
    %c1 = arith.constant 1 : index
    %c0_84 = arith.constant 0 : index
    %c0_85 = arith.constant 0 : index
    %196 = vector.load %arg4[%c1, %c0_84, %c0_85] : memref<2x32x96xf32, #tpu.memory_space<vmem>>, vector<1x32x96xf32>
    %197 = vector.shape_cast %196 : vector<1x32x96xf32> to vector<32x96xf32>
    %cst_86 = arith.constant dense<0.000000e+00> : vector<16x96xf32>
    %198 = tpu.matmul %195, %197, %cst_86 {dimension_numbers = #tpu.dot_dimension_numbers<[1], [0], [0], [1], [0, 0, 1, 1], [], []>} : vector<16x32xf32>, vector<32x96xf32>, vector<16x96xf32> -> vector<16x96xf32>
    %c1_87 = arith.constant 1 : index
    %c0_88 = arith.constant 0 : index
    %c0_89 = arith.constant 0 : index
    %199 = vector.load %arg5[%c1_87, %c0_88, %c0_89] : memref<2x1x96xf32, #tpu.memory_space<vmem>>, vector<1x1x96xf32>
    %200 = vector.shape_cast %199 : vector<1x1x96xf32> to vector<1x96xf32>
    %201 = vector.broadcast %200 : vector<1x96xf32> to vector<16x96xf32>
    %202 = arith.addf %198, %201 : vector<16x96xf32>
    %c1_90 = arith.constant 1 : index
    %c0_91 = arith.constant 0 : index
    %c0_92 = arith.constant 0 : index
    %203 = vector.load %arg6[%c1_90, %c0_91, %c0_92] : memref<2x32x32xf32, #tpu.memory_space<vmem>>, vector<1x32x32xf32>
    %204 = vector.shape_cast %203 : vector<1x32x32xf32> to vector<32x32xf32>
    %cst_93 = arith.constant 0.000000e+00 : f32
    %205 = vector.broadcast %cst_93 : f32 to vector<16x32xf32>
    %206 = vector.extract_strided_slice %202 {offsets = [0, 0], sizes = [16, 8], strides = [1, 1]} : vector<16x96xf32> to vector<16x8xf32>
    %207 = vector.extract_strided_slice %202 {offsets = [0, 32], sizes = [16, 8], strides = [1, 1]} : vector<16x96xf32> to vector<16x8xf32>
    %208 = vector.extract_strided_slice %202 {offsets = [0, 64], sizes = [16, 8], strides = [1, 1]} : vector<16x96xf32> to vector<16x8xf32>
    %209 = tpu.transpose %207, [1, 0] : vector<16x8xf32> -> vector<8x16xf32>
    %cst_94 = arith.constant dense<0.000000e+00> : vector<16x16xf32>
    %210 = tpu.matmul %206, %209, %cst_94 {dimension_numbers = #tpu.dot_dimension_numbers<[1], [0], [0], [1], [0, 0, 1, 1], [], []>} : vector<16x8xf32>, vector<8x16xf32>, vector<16x16xf32> -> vector<16x16xf32>
    %211 = arith.addf %210, %25 : vector<16x16xf32>
    %cst_95 = arith.constant dense<0xFF800000> : vector<16xf32>
    %212 = vector.multi_reduction <maximumf>, %211, %cst_95 [1] : vector<16x16xf32> to vector<16xf32>
    %213 = vector.shape_cast %212 : vector<16xf32> to vector<16x1xf32>
    %214 = vector.broadcast %213 : vector<16x1xf32> to vector<16x16xf32>
    %215 = arith.subf %211, %214 : vector<16x16xf32>
    %216 = math.exp %215 : vector<16x16xf32>
    %cst_96 = arith.constant dense<0.000000e+00> : vector<16xf32>
    %217 = vector.multi_reduction <add>, %216, %cst_96 [1] : vector<16x16xf32> to vector<16xf32>
    %218 = vector.shape_cast %217 : vector<16xf32> to vector<16x1xf32>
    %219 = tpu.reciprocal %218 {approx = true} : vector<16x1xf32> -> vector<16x1xf32>
    %220 = vector.broadcast %219 : vector<16x1xf32> to vector<16x16xf32>
    %221 = arith.mulf %216, %220 : vector<16x16xf32>
    %cst_97 = arith.constant dense<0.000000e+00> : vector<16x8xf32>
    %222 = tpu.matmul %221, %208, %cst_97 {dimension_numbers = #tpu.dot_dimension_numbers<[1], [0], [0], [1], [0, 0, 1, 1], [], []>} : vector<16x16xf32>, vector<16x8xf32>, vector<16x8xf32> -> vector<16x8xf32>
    %223 = vector.extract_strided_slice %204 {offsets = [0, 0], sizes = [8, 32], strides = [1, 1]} : vector<32x32xf32> to vector<8x32xf32>
    %cst_98 = arith.constant dense<0.000000e+00> : vector<16x32xf32>
    %224 = tpu.matmul %222, %223, %cst_98 {dimension_numbers = #tpu.dot_dimension_numbers<[1], [0], [0], [1], [0, 0, 1, 1], [], []>} : vector<16x8xf32>, vector<8x32xf32>, vector<16x32xf32> -> vector<16x32xf32>
    %225 = arith.addf %205, %224 : vector<16x32xf32>
    %226 = vector.extract_strided_slice %202 {offsets = [0, 8], sizes = [16, 8], strides = [1, 1]} : vector<16x96xf32> to vector<16x8xf32>
    %227 = vector.extract_strided_slice %202 {offsets = [0, 40], sizes = [16, 8], strides = [1, 1]} : vector<16x96xf32> to vector<16x8xf32>
    %228 = vector.extract_strided_slice %202 {offsets = [0, 72], sizes = [16, 8], strides = [1, 1]} : vector<16x96xf32> to vector<16x8xf32>
    %229 = tpu.transpose %227, [1, 0] : vector<16x8xf32> -> vector<8x16xf32>
    %cst_99 = arith.constant dense<0.000000e+00> : vector<16x16xf32>
    %230 = tpu.matmul %226, %229, %cst_99 {dimension_numbers = #tpu.dot_dimension_numbers<[1], [0], [0], [1], [0, 0, 1, 1], [], []>} : vector<16x8xf32>, vector<8x16xf32>, vector<16x16xf32> -> vector<16x16xf32>
    %231 = arith.addf %230, %25 : vector<16x16xf32>
    %cst_100 = arith.constant dense<0xFF800000> : vector<16xf32>
    %232 = vector.multi_reduction <maximumf>, %231, %cst_100 [1] : vector<16x16xf32> to vector<16xf32>
    %233 = vector.shape_cast %232 : vector<16xf32> to vector<16x1xf32>
    %234 = vector.broadcast %233 : vector<16x1xf32> to vector<16x16xf32>
    %235 = arith.subf %231, %234 : vector<16x16xf32>
    %236 = math.exp %235 : vector<16x16xf32>
    %cst_101 = arith.constant dense<0.000000e+00> : vector<16xf32>
    %237 = vector.multi_reduction <add>, %236, %cst_101 [1] : vector<16x16xf32> to vector<16xf32>
    %238 = vector.shape_cast %237 : vector<16xf32> to vector<16x1xf32>
    %239 = tpu.reciprocal %238 {approx = true} : vector<16x1xf32> -> vector<16x1xf32>
    %240 = vector.broadcast %239 : vector<16x1xf32> to vector<16x16xf32>
    %241 = arith.mulf %236, %240 : vector<16x16xf32>
    %cst_102 = arith.constant dense<0.000000e+00> : vector<16x8xf32>
    %242 = tpu.matmul %241, %228, %cst_102 {dimension_numbers = #tpu.dot_dimension_numbers<[1], [0], [0], [1], [0, 0, 1, 1], [], []>} : vector<16x16xf32>, vector<16x8xf32>, vector<16x8xf32> -> vector<16x8xf32>
    %243 = vector.extract_strided_slice %204 {offsets = [8, 0], sizes = [8, 32], strides = [1, 1]} : vector<32x32xf32> to vector<8x32xf32>
    %cst_103 = arith.constant dense<0.000000e+00> : vector<16x32xf32>
    %244 = tpu.matmul %242, %243, %cst_103 {dimension_numbers = #tpu.dot_dimension_numbers<[1], [0], [0], [1], [0, 0, 1, 1], [], []>} : vector<16x8xf32>, vector<8x32xf32>, vector<16x32xf32> -> vector<16x32xf32>
    %245 = arith.addf %225, %244 : vector<16x32xf32>
    %246 = vector.extract_strided_slice %202 {offsets = [0, 16], sizes = [16, 8], strides = [1, 1]} : vector<16x96xf32> to vector<16x8xf32>
    %247 = vector.extract_strided_slice %202 {offsets = [0, 48], sizes = [16, 8], strides = [1, 1]} : vector<16x96xf32> to vector<16x8xf32>
    %248 = vector.extract_strided_slice %202 {offsets = [0, 80], sizes = [16, 8], strides = [1, 1]} : vector<16x96xf32> to vector<16x8xf32>
    %249 = tpu.transpose %247, [1, 0] : vector<16x8xf32> -> vector<8x16xf32>
    %cst_104 = arith.constant dense<0.000000e+00> : vector<16x16xf32>
    %250 = tpu.matmul %246, %249, %cst_104 {dimension_numbers = #tpu.dot_dimension_numbers<[1], [0], [0], [1], [0, 0, 1, 1], [], []>} : vector<16x8xf32>, vector<8x16xf32>, vector<16x16xf32> -> vector<16x16xf32>
    %251 = arith.addf %250, %25 : vector<16x16xf32>
    %cst_105 = arith.constant dense<0xFF800000> : vector<16xf32>
    %252 = vector.multi_reduction <maximumf>, %251, %cst_105 [1] : vector<16x16xf32> to vector<16xf32>
    %253 = vector.shape_cast %252 : vector<16xf32> to vector<16x1xf32>
    %254 = vector.broadcast %253 : vector<16x1xf32> to vector<16x16xf32>
    %255 = arith.subf %251, %254 : vector<16x16xf32>
    %256 = math.exp %255 : vector<16x16xf32>
    %cst_106 = arith.constant dense<0.000000e+00> : vector<16xf32>
    %257 = vector.multi_reduction <add>, %256, %cst_106 [1] : vector<16x16xf32> to vector<16xf32>
    %258 = vector.shape_cast %257 : vector<16xf32> to vector<16x1xf32>
    %259 = tpu.reciprocal %258 {approx = true} : vector<16x1xf32> -> vector<16x1xf32>
    %260 = vector.broadcast %259 : vector<16x1xf32> to vector<16x16xf32>
    %261 = arith.mulf %256, %260 : vector<16x16xf32>
    %cst_107 = arith.constant dense<0.000000e+00> : vector<16x8xf32>
    %262 = tpu.matmul %261, %248, %cst_107 {dimension_numbers = #tpu.dot_dimension_numbers<[1], [0], [0], [1], [0, 0, 1, 1], [], []>} : vector<16x16xf32>, vector<16x8xf32>, vector<16x8xf32> -> vector<16x8xf32>
    %263 = vector.extract_strided_slice %204 {offsets = [16, 0], sizes = [8, 32], strides = [1, 1]} : vector<32x32xf32> to vector<8x32xf32>
    %cst_108 = arith.constant dense<0.000000e+00> : vector<16x32xf32>
    %264 = tpu.matmul %262, %263, %cst_108 {dimension_numbers = #tpu.dot_dimension_numbers<[1], [0], [0], [1], [0, 0, 1, 1], [], []>} : vector<16x8xf32>, vector<8x32xf32>, vector<16x32xf32> -> vector<16x32xf32>
    %265 = arith.addf %245, %264 : vector<16x32xf32>
    %266 = vector.extract_strided_slice %202 {offsets = [0, 24], sizes = [16, 8], strides = [1, 1]} : vector<16x96xf32> to vector<16x8xf32>
    %267 = vector.extract_strided_slice %202 {offsets = [0, 56], sizes = [16, 8], strides = [1, 1]} : vector<16x96xf32> to vector<16x8xf32>
    %268 = vector.extract_strided_slice %202 {offsets = [0, 88], sizes = [16, 8], strides = [1, 1]} : vector<16x96xf32> to vector<16x8xf32>
    %269 = tpu.transpose %267, [1, 0] : vector<16x8xf32> -> vector<8x16xf32>
    %cst_109 = arith.constant dense<0.000000e+00> : vector<16x16xf32>
    %270 = tpu.matmul %266, %269, %cst_109 {dimension_numbers = #tpu.dot_dimension_numbers<[1], [0], [0], [1], [0, 0, 1, 1], [], []>} : vector<16x8xf32>, vector<8x16xf32>, vector<16x16xf32> -> vector<16x16xf32>
    %271 = arith.addf %270, %25 : vector<16x16xf32>
    %cst_110 = arith.constant dense<0xFF800000> : vector<16xf32>
    %272 = vector.multi_reduction <maximumf>, %271, %cst_110 [1] : vector<16x16xf32> to vector<16xf32>
    %273 = vector.shape_cast %272 : vector<16xf32> to vector<16x1xf32>
    %274 = vector.broadcast %273 : vector<16x1xf32> to vector<16x16xf32>
    %275 = arith.subf %271, %274 : vector<16x16xf32>
    %276 = math.exp %275 : vector<16x16xf32>
    %cst_111 = arith.constant dense<0.000000e+00> : vector<16xf32>
    %277 = vector.multi_reduction <add>, %276, %cst_111 [1] : vector<16x16xf32> to vector<16xf32>
    %278 = vector.shape_cast %277 : vector<16xf32> to vector<16x1xf32>
    %279 = tpu.reciprocal %278 {approx = true} : vector<16x1xf32> -> vector<16x1xf32>
    %280 = vector.broadcast %279 : vector<16x1xf32> to vector<16x16xf32>
    %281 = arith.mulf %276, %280 : vector<16x16xf32>
    %cst_112 = arith.constant dense<0.000000e+00> : vector<16x8xf32>
    %282 = tpu.matmul %281, %268, %cst_112 {dimension_numbers = #tpu.dot_dimension_numbers<[1], [0], [0], [1], [0, 0, 1, 1], [], []>} : vector<16x16xf32>, vector<16x8xf32>, vector<16x8xf32> -> vector<16x8xf32>
    %283 = vector.extract_strided_slice %204 {offsets = [24, 0], sizes = [8, 32], strides = [1, 1]} : vector<32x32xf32> to vector<8x32xf32>
    %cst_113 = arith.constant dense<0.000000e+00> : vector<16x32xf32>
    %284 = tpu.matmul %282, %283, %cst_113 {dimension_numbers = #tpu.dot_dimension_numbers<[1], [0], [0], [1], [0, 0, 1, 1], [], []>} : vector<16x8xf32>, vector<8x32xf32>, vector<16x32xf32> -> vector<16x32xf32>
    %285 = arith.addf %265, %284 : vector<16x32xf32>
    %c1_114 = arith.constant 1 : index
    %c0_115 = arith.constant 0 : index
    %c0_116 = arith.constant 0 : index
    %286 = vector.load %arg7[%c1_114, %c0_115, %c0_116] : memref<2x1x32xf32, #tpu.memory_space<vmem>>, vector<1x1x32xf32>
    %287 = vector.shape_cast %286 : vector<1x1x32xf32> to vector<1x32xf32>
    %288 = vector.broadcast %287 : vector<1x32xf32> to vector<16x32xf32>
    %289 = arith.addf %285, %288 : vector<16x32xf32>
    %290 = arith.addf %195, %289 : vector<16x32xf32>
    %c1_117 = arith.constant 1 : index
    %c0_118 = arith.constant 0 : index
    %c0_119 = arith.constant 0 : index
    %291 = vector.load %arg8[%c1_117, %c0_118, %c0_119] : memref<2x1x32xf32, #tpu.memory_space<vmem>>, vector<1x1x32xf32>
    %292 = vector.shape_cast %291 : vector<1x1x32xf32> to vector<1x32xf32>
    %c1_120 = arith.constant 1 : index
    %c0_121 = arith.constant 0 : index
    %c0_122 = arith.constant 0 : index
    %293 = vector.load %arg9[%c1_120, %c0_121, %c0_122] : memref<2x1x32xf32, #tpu.memory_space<vmem>>, vector<1x1x32xf32>
    %294 = vector.shape_cast %293 : vector<1x1x32xf32> to vector<1x32xf32>
    %cst_123 = arith.constant dense<0.000000e+00> : vector<16xf32>
    %295 = vector.multi_reduction <add>, %290, %cst_123 [1] : vector<16x32xf32> to vector<16xf32>
    %296 = vector.shape_cast %295 : vector<16xf32> to vector<16x1xf32>
    %cst_124 = arith.constant 3.200000e+01 : f32
    %297 = vector.broadcast %cst_124 : f32 to vector<16x1xf32>
    %298 = arith.divf %296, %297 : vector<16x1xf32>
    %299 = vector.broadcast %298 : vector<16x1xf32> to vector<16x32xf32>
    %300 = arith.subf %290, %299 : vector<16x32xf32>
    %301 = arith.mulf %300, %300 : vector<16x32xf32>
    %cst_125 = arith.constant dense<0.000000e+00> : vector<16xf32>
    %302 = vector.multi_reduction <add>, %301, %cst_125 [1] : vector<16x32xf32> to vector<16xf32>
    %303 = vector.shape_cast %302 : vector<16xf32> to vector<16x1xf32>
    %cst_126 = arith.constant 3.200000e+01 : f32
    %304 = vector.broadcast %cst_126 : f32 to vector<16x1xf32>
    %305 = arith.divf %303, %304 : vector<16x1xf32>
    %306 = vector.broadcast %298 : vector<16x1xf32> to vector<16x32xf32>
    %307 = arith.subf %290, %306 : vector<16x32xf32>
    %cst_127 = arith.constant 9.99999996E-13 : f32
    %308 = vector.broadcast %cst_127 : f32 to vector<16x1xf32>
    %309 = arith.addf %305, %308 : vector<16x1xf32>
    %310 = math.rsqrt %309 : vector<16x1xf32>
    %311 = vector.broadcast %310 : vector<16x1xf32> to vector<16x32xf32>
    %312 = arith.mulf %307, %311 : vector<16x32xf32>
    %313 = vector.broadcast %292 : vector<1x32xf32> to vector<16x32xf32>
    %314 = arith.mulf %312, %313 : vector<16x32xf32>
    %315 = vector.broadcast %294 : vector<1x32xf32> to vector<16x32xf32>
    %316 = arith.addf %314, %315 : vector<16x32xf32>
    %c1_128 = arith.constant 1 : index
    %c0_129 = arith.constant 0 : index
    %c0_130 = arith.constant 0 : index
    %317 = vector.load %arg10[%c1_128, %c0_129, %c0_130] : memref<2x32x64xf32, #tpu.memory_space<vmem>>, vector<1x32x64xf32>
    %318 = vector.shape_cast %317 : vector<1x32x64xf32> to vector<32x64xf32>
    %cst_131 = arith.constant dense<0.000000e+00> : vector<16x64xf32>
    %319 = tpu.matmul %316, %318, %cst_131 {dimension_numbers = #tpu.dot_dimension_numbers<[1], [0], [0], [1], [0, 0, 1, 1], [], []>} : vector<16x32xf32>, vector<32x64xf32>, vector<16x64xf32> -> vector<16x64xf32>
    %c1_132 = arith.constant 1 : index
    %c0_133 = arith.constant 0 : index
    %c0_134 = arith.constant 0 : index
    %320 = vector.load %arg11[%c1_132, %c0_133, %c0_134] : memref<2x1x64xf32, #tpu.memory_space<vmem>>, vector<1x1x64xf32>
    %321 = vector.shape_cast %320 : vector<1x1x64xf32> to vector<1x64xf32>
    %322 = vector.broadcast %321 : vector<1x64xf32> to vector<16x64xf32>
    %323 = arith.addf %319, %322 : vector<16x64xf32>
    %cst_135 = arith.constant 5.000000e-01 : f32
    %324 = vector.broadcast %cst_135 : f32 to vector<16x64xf32>
    %325 = arith.mulf %324, %323 : vector<16x64xf32>
    %cst_136 = arith.constant 0.707106769 : f32
    %326 = vector.broadcast %cst_136 : f32 to vector<16x64xf32>
    %327 = arith.mulf %323, %326 : vector<16x64xf32>
    %328 = math.erf %327 : vector<16x64xf32>
    %cst_137 = arith.constant 1.000000e+00 : f32
    %329 = vector.broadcast %cst_137 : f32 to vector<16x64xf32>
    %330 = arith.addf %329, %328 : vector<16x64xf32>
    %331 = arith.mulf %325, %330 : vector<16x64xf32>
    %c1_138 = arith.constant 1 : index
    %c0_139 = arith.constant 0 : index
    %c0_140 = arith.constant 0 : index
    %332 = vector.load %arg12[%c1_138, %c0_139, %c0_140] : memref<2x64x32xf32, #tpu.memory_space<vmem>>, vector<1x64x32xf32>
    %333 = vector.shape_cast %332 : vector<1x64x32xf32> to vector<64x32xf32>
    %cst_141 = arith.constant dense<0.000000e+00> : vector<16x32xf32>
    %334 = tpu.matmul %331, %333, %cst_141 {dimension_numbers = #tpu.dot_dimension_numbers<[1], [0], [0], [1], [0, 0, 1, 1], [], []>} : vector<16x64xf32>, vector<64x32xf32>, vector<16x32xf32> -> vector<16x32xf32>
    %c1_142 = arith.constant 1 : index
    %c0_143 = arith.constant 0 : index
    %c0_144 = arith.constant 0 : index
    %335 = vector.load %arg13[%c1_142, %c0_143, %c0_144] : memref<2x1x32xf32, #tpu.memory_space<vmem>>, vector<1x1x32xf32>
    %336 = vector.shape_cast %335 : vector<1x1x32xf32> to vector<1x32xf32>
    %337 = vector.broadcast %336 : vector<1x32xf32> to vector<16x32xf32>
    %338 = arith.addf %334, %337 : vector<16x32xf32>
    %339 = arith.addf %316, %338 : vector<16x32xf32>
    %c1_145 = arith.constant 1 : index
    %c0_146 = arith.constant 0 : index
    %c0_147 = arith.constant 0 : index
    %340 = vector.load %arg14[%c1_145, %c0_146, %c0_147] : memref<2x1x32xf32, #tpu.memory_space<vmem>>, vector<1x1x32xf32>
    %341 = vector.shape_cast %340 : vector<1x1x32xf32> to vector<1x32xf32>
    %c1_148 = arith.constant 1 : index
    %c0_149 = arith.constant 0 : index
    %c0_150 = arith.constant 0 : index
    %342 = vector.load %arg15[%c1_148, %c0_149, %c0_150] : memref<2x1x32xf32, #tpu.memory_space<vmem>>, vector<1x1x32xf32>
    %343 = vector.shape_cast %342 : vector<1x1x32xf32> to vector<1x32xf32>
    %cst_151 = arith.constant dense<0.000000e+00> : vector<16xf32>
    %344 = vector.multi_reduction <add>, %339, %cst_151 [1] : vector<16x32xf32> to vector<16xf32>
    %345 = vector.shape_cast %344 : vector<16xf32> to vector<16x1xf32>
    %cst_152 = arith.constant 3.200000e+01 : f32
    %346 = vector.broadcast %cst_152 : f32 to vector<16x1xf32>
    %347 = arith.divf %345, %346 : vector<16x1xf32>
    %348 = vector.broadcast %347 : vector<16x1xf32> to vector<16x32xf32>
    %349 = arith.subf %339, %348 : vector<16x32xf32>
    %350 = arith.mulf %349, %349 : vector<16x32xf32>
    %cst_153 = arith.constant dense<0.000000e+00> : vector<16xf32>
    %351 = vector.multi_reduction <add>, %350, %cst_153 [1] : vector<16x32xf32> to vector<16xf32>
    %352 = vector.shape_cast %351 : vector<16xf32> to vector<16x1xf32>
    %cst_154 = arith.constant 3.200000e+01 : f32
    %353 = vector.broadcast %cst_154 : f32 to vector<16x1xf32>
    %354 = arith.divf %352, %353 : vector<16x1xf32>
    %355 = vector.broadcast %347 : vector<16x1xf32> to vector<16x32xf32>
    %356 = arith.subf %339, %355 : vector<16x32xf32>
    %cst_155 = arith.constant 9.99999996E-13 : f32
    %357 = vector.broadcast %cst_155 : f32 to vector<16x1xf32>
    %358 = arith.addf %354, %357 : vector<16x1xf32>
    %359 = math.rsqrt %358 : vector<16x1xf32>
    %360 = vector.broadcast %359 : vector<16x1xf32> to vector<16x32xf32>
    %361 = arith.mulf %356, %360 : vector<16x32xf32>
    %362 = vector.broadcast %341 : vector<1x32xf32> to vector<16x32xf32>
    %363 = arith.mulf %361, %362 : vector<16x32xf32>
    %364 = vector.broadcast %343 : vector<1x32xf32> to vector<16x32xf32>
    %365 = arith.addf %363, %364 : vector<16x32xf32>
    %366 = vector.extract_strided_slice %365 {offsets = [0, 0], sizes = [1, 32], strides = [1, 1]} : vector<16x32xf32> to vector<1x32xf32>
    %367 = vector.extract_strided_slice %365 {offsets = [8, 0], sizes = [1, 32], strides = [1, 1]} : vector<16x32xf32> to vector<1x32xf32>
    %368 = tpu.concatenate %366, %367 in 0 : vector<1x32xf32>, vector<1x32xf32> -> vector<2x32xf32>
    %c0_156 = arith.constant 0 : index
    %c0_157 = arith.constant 0 : index
    %369 = vector.load %arg16[%c0_156, %c0_157] : memref<32x32xf32, #tpu.memory_space<vmem>>, vector<32x32xf32>
    %cst_158 = arith.constant dense<0.000000e+00> : vector<2x32xf32>
    %370 = tpu.matmul %368, %369, %cst_158 {dimension_numbers = #tpu.dot_dimension_numbers<[1], [0], [0], [1], [0, 0, 1, 1], [], []>} : vector<2x32xf32>, vector<32x32xf32>, vector<2x32xf32> -> vector<2x32xf32>
    %c0_159 = arith.constant 0 : index
    %c0_160 = arith.constant 0 : index
    %371 = vector.load %arg17[%c0_159, %c0_160] : memref<1x32xf32, #tpu.memory_space<vmem>>, vector<1x32xf32>
    %372 = vector.broadcast %371 : vector<1x32xf32> to vector<2x32xf32>
    %373 = arith.addf %370, %372 : vector<2x32xf32>
    %374 = math.tanh %373 : vector<2x32xf32>
    %c0_161 = arith.constant 0 : index
    %c0_162 = arith.constant 0 : index
    %375 = vector.load %arg18[%c0_161, %c0_162] : memref<32x1xf32, #tpu.memory_space<vmem>>, vector<32x1xf32>
    %cst_163 = arith.constant dense<0.000000e+00> : vector<2x1xf32>
    %376 = tpu.matmul %374, %375, %cst_163 {dimension_numbers = #tpu.dot_dimension_numbers<[1], [0], [0], [1], [0, 0, 1, 1], [], []>} : vector<2x32xf32>, vector<32x1xf32>, vector<2x1xf32> -> vector<2x1xf32>
    %c0_164 = arith.constant 0 : index
    %c0_165 = arith.constant 0 : index
    %377 = vector.load %arg19[%c0_164, %c0_165] : memref<1x1xf32, #tpu.memory_space<vmem>>, vector<1x1xf32>
    %378 = vector.broadcast %377 : vector<1x1xf32> to vector<2x1xf32>
    %379 = arith.addf %376, %378 : vector<2x1xf32>
    %c0_166 = arith.constant 0 : index
    %c0_167 = arith.constant 0 : index
    %380 = vector.load %arg20[%c0_166, %c0_167] : memref<2x1xf32, #tpu.memory_space<vmem>>, vector<2x1xf32>
    tpu.vector_store %arg20[%c0_166, %c0_167], %379 {strides = array<i32>} : memref<2x1xf32, #tpu.memory_space<vmem>>, vector<2x1xf32>,
    return
  }
}

</mosaic_0001>

<bundles_post_ra>
// kernel: qe_model_forward.1
= control target key start
LH: loop header
LB: loop body
LE: loop exit
PB: predicated region body
PF: predicated region fallthrough
CT: control target
= control target key end

     0   :  { %vm71_vm0 = vcmask 261120   ;;  %vm219_vm1 = vcmask 64512   ;;  %s3987_s28 = smov 96   ;;  %vm303_vm2 = vcmask 130048   ;;  %s3988_s21 = smov 64   ;;  %vm1513_vm3 = vcmask 523264   ;;  %s4622_s0 = inlined_call_operand.vmem [shape: f32[16,32], index: 0, kind: input, shape index: {}]   ;;  %s4623_s4 = inlined_call_operand.vmem [shape: f32[2,32,96], index: 4, kind: input, shape index: {}]   ;;  %s4624_s2 = inlined_call_operand.vmem [shape: f32[1,32], index: 2, kind: input, shape index: {}]   ;;  %s4625_s3 = inlined_call_operand.vmem [shape: f32[1,32], index: 3, kind: input, shape index: {}]   ;;  %s4626_s5 = inlined_call_operand.vmem [shape: f32[2,1,96], index: 5, kind: input, shape index: {}]   ;;  %s4627_s1 = inlined_call_operand.vmem [shape: f32[16,16], index: 1, kind: input, shape index: {}]   ;;  %s4628_s6 = inlined_call_operand.vmem [shape: f32[2,32,32], index: 6, kind: input, shape index: {}]   ;;  %s4629_s7 = inlined_call_operand.vmem [shape: f32[2,1,32], index: 7, kind: input, shape index: {}]   ;;  %s4630_s10 = inlined_call_operand.vmem [shape: f32[2,32,64], index: 10, kind: input, shape index: {}]   ;;  %s4631_s8 = inlined_call_operand.vmem [shape: f32[2,1,32], index: 8, kind: input, shape index: {}]   ;;  %s4632_s9 = inlined_call_operand.vmem [shape: f32[2,1,32], index: 9, kind: input, shape index: {}]   ;;  %s4633_s12 = inlined_call_operand.vmem [shape: f32[2,64,32], index: 12, kind: input, shape index: {}]   ;;  %s4634_s11 = inlined_call_operand.vmem [shape: f32[2,1,64], index: 11, kind: input, shape index: {}]   ;;  %s4635_s13 = inlined_call_operand.vmem [shape: f32[2,1,32], index: 13, kind: input, shape index: {}]   ;;  %s4636_s14 = inlined_call_operand.vmem [shape: f32[2,1,32], index: 14, kind: input, shape index: {}]   ;;  %s4637_s15 = inlined_call_operand.vmem [shape: f32[2,1,32], index: 15, kind: input, shape index: {}]   ;;  %s4638_s16 = inlined_call_operand.vmem [shape: f32[32,32], index: 16, kind: input, shape index: {}]   ;;  %s4639_s18 = inlined_call_operand.vmem [shape: f32[32,1], index: 18, kind: input, shape index: {}]   ;;  %s4640_s19 = inlined_call_operand.<no memory space> [shape: f32[1,1], index: 19, kind: input, shape index: {}]   ;;  %s4641_s17 = inlined_call_operand.vmem [shape: f32[1,32], index: 17, kind: input, shape index: {}]   ;;  %s4642_s20 = inlined_call_operand.vmem [shape: f32[2,1], index: 20, kind: output, shape index: {}]  }
   0x1   :  { %4658 = sst [smem:[#allocation3_spill]] %s4622_s0  ;;  %v4163_v41 = vld [vmem:[%s4627_s1 + $0x8] sm:$0xff]  ;;  %v4168_v43 = vld [vmem:[%s4627_s1] sm:$0xff]  ;;  %s4656_s25 = smov 80   ;;  %vm3999_vm4 = vmmov 0   ;;  %vm3177_vm5 = vcmask 1040384  }
   0x2   :  { %4659 = sst [smem:[#allocation4_spill]] %s4623_s4  ;;  %s3989_s4 = smov 88   ;;  %vm3348_vm6 = vcmask 1024  }
   0x3   :  { %4660 = sst [smem:[#allocation5_spill]] %s4624_s2  ;;  %s4650_s29 = smov 104  }
   0x4   :  { %4661 = sst [smem:[#allocation6_spill]] %s4625_s3  ;;  %s4654_s3 = smov 112  }
   0x5   :  { %4662 = sst [smem:[#allocation7_spill]] %s4626_s5  ;;  %s4652_s5 = smov 72  }
   0x6   :  { %s4663_s23 = sld [smem:[#allocation3_spill]]  ;;  %s4646_s24 = smov 40  }
   0x7   :  { %s4664_s26 = sld [smem:[#allocation4_spill]] }
   0x8   :  { %s4665_s22 = sld [smem:[#allocation5_spill]] }
   0x9   :  { %s4666_s2 = sld [smem:[#allocation6_spill]] }
   0xa   :  { %s4667_s27 = sld [smem:[#allocation7_spill]] }
   0xc   :  { %v67_v0 = vld [vmem:[%s4663_s23] sm:$0xff]  ;;  %v68_v1 = vld [vmem:[%s4663_s23 + $0x8] sm:$0xff]  ;;  %s4648_s23 = smov 48  }
   0xd   :  { %v72_v2 = vsel %vm71_vm0, %v67_v0, 0.0  ;;  %v75_v3 = vsel %vm71_vm0, %v68_v1, 0.0  ;;  %v120_v14 = vld [vmem:[%s4664_s26 + $0x18] sm:$0xff]  ;;  %v119_v15 = vld [vmem:[%s4664_s26 + $0x10] sm:$0xff]  ;;  %v118_v16 = vld [vmem:[%s4664_s26 + $0x8] sm:$0xff] }
   0xe   :  { %73 = vadd.xlane.f32.xlu0 %v72_v2  ;;  %3622 = vmatprep.subr.mxu0 %v120_v14  ;;  %v117_v17 = vld [vmem:[%s4664_s26] sm:$0xff] }
   0xf   :  { %3623 = vmatpush3.msra.mxu0 %v120_v14  ;;  %v3354_v25 = vld [vmem:[%s4665_s22] ss:$0 sm:$0xff]  ;;  %s3990_s22 = smov 120  }
  0x10   :  { %3624 = vmatprep.subr.mxu0 %v119_v15  ;;  %v3355_v27 = vld [vmem:[%s4666_s2] ss:$0 sm:$0xff]  ;;  %s3991_s2 = smov 56  }
  0x11   :  { %3625 = vmatpush3.msra.mxu0 %v119_v15  ;;  %v3356_v34 = vld [vmem:[%s4667_s27] ss:$0 sm:$0xff] }
  0x12   :  { %76 = vadd.xlane.f32.xlu0 %v75_v3  ;;  %3626 = vmatprep.subr.mxu0 %v118_v16 }
  0x13   :  { %3627 = vmatpush3.msra.mxu0 %v118_v16 }
  0x14   :  { %3628 = vmatprep.subr.mxu0 %v117_v17 }
  0x15   :  { %3629 = vmatpush3.msra.mxu0 %v117_v17 }
  0x97   :  { %v74_v4 = vpop.xlane.xlu0 %73 }
  0x98   :  { %v79_v5 = vmul.f32 0.03125, %v74_v4 }
  0x9a   :  { %v81_v6 = vsub.f32 %v67_v0, %v79_v5 }
  0x9b   :  { %v77_v7 = vpop.xlane.xlu0 %76 }
  0x9c   :  { %v80_v8 = vmul.f32 0.03125, %v77_v7  ;;  %v83_v9 = vmul.f32 %v81_v6, %v81_v6  ;;  %v209_v7 = vld [vmem:[%s4628_s6] sm:$0xff] }
  0x9e   :  { %v82_v10 = vsub.f32 %v68_v1, %v80_v8  ;;  %v85_v11 = vsel %vm71_vm0, %v83_v9, 0.0 }
  0x9f   :  { %86 = vadd.xlane.f32.xlu1 %v85_v11 }
  0xa0   :  { %v84_v12 = vmul.f32 %v82_v10, %v82_v10 }
  0xa2   :  { %v88_v13 = vsel %vm71_vm0, %v84_v12, 0.0 }
  0xa3   :  { %89 = vadd.xlane.f32.xlu1 %v88_v13 }
 0x128   :  { %v87_v18 = vpop.xlane.xlu1 %86 }
 0x129   :  { %v91_v19 = vmul.f32 0.03125, %v87_v18 }
 0x12b   :  { %v93_v20 = vadd.f32 1e-12, %v91_v19 }
 0x12c   :  { %v90_v21 = vpop.xlane.xlu1 %89 }
 0x12d   :  { %3891 = vrsqrt.f32 %v93_v20  ;;  %v92_v22 = vmul.f32 0.03125, %v90_v21 }
 0x12f   :  { %v94_v23 = vadd.f32 1e-12, %v92_v22 }
 0x131   :  { %3893 = vrsqrt.f32 %v94_v23 }
 0x13a   :  { %v3892_v24 = vpop.eup %3891 }
 0x13b   :  { %v97_v26 = vmul.f32 %v3892_v24, %v81_v6 }
 0x13d   :  { %v105_v28 = vmul.f32 %v3354_v25, %v97_v26 }
 0x13e   :  { %v3894_v29 = vpop.eup %3893 }
 0x13f   :  { %v98_v30 = vmul.f32 %v3894_v29, %v82_v10  ;;  %v4133_v31 = vadd.f32 %v3355_v27, %v105_v28 }
 0x141   :  { %v106_v32 = vmul.f32 %v3354_v25, %v98_v30  ;;  %3630 = vmatprep.mubr.msk.f32.mxu0 %vm71_vm0, %v4133_v31  ;;  %v210_v30 = vld [vmem:[%s4628_s6 + $0x8] sm:$0xff] }
 0x143   :  { %v4137_v33 = vadd.f32 %v3355_v27, %v106_v32 }
 0x145   :  { %3631 = vmatmul.mubr.msk.f32.vlgmr.msra.gmra.mxu0 %vm71_vm0, %v4137_v33 }
 0x205   :  { %v3632_v35 = vpop.f32.mrf.mxu0 }
 0x206   :  { %v4144_v36 = vadd.f32 %v3632_v35, %v3356_v34 }
 0x207   :  { %v200_v37 = vpop.f32.mrf.mxu0 }
 0x208   :  { %v4146_v38 = vadd.f32 %v3356_v34, %v200_v37  ;;  %217 = vrot.lane.b32.xlu0 %v4144_v36, %s3987_s28 }
 0x20a   :  { %215 = vrot.lane.b32.xlu1 %v4146_v38, %s3987_s28  ;;  %3637 = vmatprep.mubr.msk.f32.mxu1 %vm219_vm1, %v4146_v38 }
 0x27a   :  { %v218_v39 = vpop.permute.xlu0 %217 }
 0x27b   :  { %3633 = vmatprep.subr.msk.mxu1 %vm219_vm1, %v218_v39 }
 0x27c   :  { %3634 = vmatpush3.xpose.msk.msra.mxu1 %vm219_vm1, %v218_v39  ;;  %v216_v40 = vpop.permute.xlu1 %215 }
 0x27d   :  { %3635 = vmatprep.subr.msk.mxu1 %vm219_vm1, %v216_v40 }
 0x280   :  { %3636 = vmatpush3.xpose.msk.msra.mxu1 %vm219_vm1, %v216_v40 }
 0x283   :  { %3638 = vmatmul.mubr.msk.f32.vlgmr.msra.gmra.mxu1 %vm219_vm1, %v4144_v36 }
 0x343   :  { %v3639_v42 = vpop.f32.mrf.mxu1 }
 0x344   :  { %v300_v44 = vadd.f32 %v3639_v42, %v4163_v41 }
 0x345   :  { %v294_v45 = vpop.f32.mrf.mxu1 }
 0x346   :  { %v295_v46 = vadd.f32 %v294_v45, %v4168_v43  ;;  %v307_v47 = vsel %vm303_vm2, %v300_v44, -inf }
 0x347   :  { %308 = vmax.xlane.f32.xlu0 %v307_v47 }
 0x348   :  { %v304_v48 = vsel %vm303_vm2, %v295_v46, -inf }
 0x349   :  { %305 = vmax.xlane.f32.xlu1 %v304_v48 }
 0x3d0   :  { %v309_v49 = vpop.xlane.xlu0 %308 }
 0x3d1   :  { %v311_v50 = vsub.f32 %v300_v44, %v309_v49 }
 0x3d2   :  { %v306_v51 = vpop.xlane.xlu1 %305 }
 0x3d3   :  { %v314_v52 = vmul.f32 1.442695, %v311_v50  ;;  %v310_v53 = vsub.f32 %v295_v46, %v306_v51 }
 0x3d5   :  { %3895 = vpow2.f32 %v314_v52  ;;  %v312_v54 = vmul.f32 1.442695, %v310_v53 }
 0x3d7   :  { %3897 = vpow2.f32 %v312_v54 }
 0x3e2   :  { %v3896_v55 = vpop.eup %3895 }
 0x3e3   :  { %v319_v56 = vsel %vm303_vm2, %v3896_v55, 0.0 }
 0x3e4   :  { %v3898_v57 = vpop.eup %3897  ;;  %320 = vadd.xlane.f32.xlu1 %v319_v56 }
 0x3e5   :  { %v316_v58 = vsel %vm303_vm2, %v3898_v57, 0.0 }
 0x3e6   :  { %317 = vadd.xlane.f32.xlu0 %v316_v58 }
 0x3f5   :  { %326 = vrot.lane.b32.xlu1 %v4146_v38, %s3988_s21 }
 0x3f9   :  { %419 = vrot.lane.b32.xlu1 %v4144_v36, %s3989_s4 }
 0x3fc   :  { %328 = vrot.lane.b32.xlu0 %v4144_v36, %s3988_s21 }
 0x3fd   :  { %417 = vrot.lane.b32.xlu1 %v4146_v38, %s3989_s4 }
 0x400   :  { %413 = vrot.lane.b32.xlu0 %v4146_v38, %s3990_s22 }
 0x401   :  { %415 = vrot.lane.b32.xlu1 %v4144_v36, %s3990_s22 }
 0x46d   :  { %v321_v59 = vpop.xlane.xlu1 %320 }
 0x46e   :  { %3899 = vrcp.f32 %v321_v59 }
 0x46f   :  { %v318_v60 = vpop.xlane.xlu0 %317 }
 0x470   :  { %3901 = vrcp.f32 %v318_v60 }
 0x471   :  { %v327_v61 = vpop.permute.xlu1 %326 }
 0x473   :  { %v329_v62 = vpop.permute.xlu0 %328 }
 0x474   :  { %3640 = vmatprep.subr.mxu1 %v329_v62 }
 0x475   :  { %3641 = vmatpush3.msra.mxu1 %v329_v62  ;;  %v420_v63 = vpop.permute.xlu1 %419 }
 0x476   :  { %3642 = vmatprep.subr.mxu1 %v327_v61 }
 0x477   :  { %3643 = vmatpush3.msra.mxu1 %v327_v61  ;;  %v414_v4 = vpop.permute.xlu0 %413 }
 0x478   :  { %3647 = vmatprep.subr.msk.mxu1 %vm219_vm1, %v420_v63 }
 0x479   :  { %v418_v5 = vpop.permute.xlu1 %417 }
 0x47b   :  { %v3900_v0 = vpop.eup %3899 }
 0x47c   :  { %v325_v3 = vmul.f32 %v3900_v0, %v3896_v55 }
 0x47d   :  { %v3902_v1 = vpop.eup %3901  ;;  %v416_v6 = vpop.permute.xlu1 %415 }
 0x47e   :  { %v324_v2 = vmul.f32 %v3902_v1, %v3898_v57 }
 0x480   :  { %3644 = vmatprep.mubr.msk.f32.mxu1 %vm303_vm2, %v324_v2 }
 0x481   :  { %3645 = vmatmul.mubr.msk.f32.vlgmr.msra.gmra.mxu1 %vm303_vm2, %v325_v3 }
 0x482   :  { %3648 = vmatpush3.xpose.msk.msra.mxu1 %vm219_vm1, %v420_v63  ;;  %3651 = vmatprep.mubr.msk.f32.mxu1 %vm219_vm1, %v414_v4 }
 0x483   :  { %3649 = vmatprep.subr.msk.mxu1 %vm219_vm1, %v418_v5 }
 0x486   :  { %3650 = vmatpush3.xpose.msk.msra.mxu1 %vm219_vm1, %v418_v5 }
 0x487   :  { %3666 = vmatprep.subr.mxu1 %v209_v7 }
 0x489   :  { %3652 = vmatmul.mubr.msk.f32.vlgmr.msra.gmra.mxu1 %vm219_vm1, %v416_v6 }
 0x48a   :  { %3667 = vmatpush3.msra.mxu1 %v209_v7 }
 0x541   :  { %v3646_v8 = vpop.f32.mrf.mxu1 }
 0x543   :  { %v404_v9 = vpop.f32.mrf.mxu1 }
 0x544   :  { %3668 = vmatprep.mubr.msk.f32.mxu1 %vm219_vm1, %v404_v9 }
 0x545   :  { %3669 = vmatmul.mubr.msk.f32.vlgmr.msra.gmra.mxu1 %vm219_vm1, %v3646_v8 }
 0x549   :  { %v3653_v10 = vpop.f32.mrf.mxu1 }
 0x54a   :  { %v501_v11 = vadd.f32 %v3653_v10, %v4163_v41 }
 0x54b   :  { %v495_v12 = vpop.f32.mrf.mxu1 }
 0x54c   :  { %v496_v13 = vadd.f32 %v495_v12, %v4168_v43  ;;  %v507_v14 = vsel %vm303_vm2, %v501_v11, -inf }
 0x54d   :  { %508 = vmax.xlane.f32.xlu1 %v507_v14 }
 0x54e   :  { %v504_v15 = vsel %vm303_vm2, %v496_v13, -inf }
 0x54f   :  { %505 = vmax.xlane.f32.xlu0 %v504_v15 }
 0x55e   :  { %526 = vrot.lane.b32.xlu1 %v4146_v38, %s3991_s2 }
 0x562   :  { %781 = vrot.lane.b32.xlu1 %v4144_v36, %s4656_s25 }
 0x566   :  { %779 = vrot.lane.b32.xlu1 %v4146_v38, %s4656_s25  ;;  %s4672_s25 = smov 48  }
 0x56a   :  { %777 = vrot.lane.b32.xlu1 %v4144_v36, %s4654_s3 }
 0x56e   :  { %1062 = vrot.lane.b32.xlu1 %v4146_v38, %s4652_s5 }
 0x572   :  { %1060 = vrot.lane.b32.xlu1 %v4144_v36, %s4650_s29 }
 0x5d6   :  { %v509_v16 = vpop.xlane.xlu1 %508 }
 0x5d7   :  { %v511_v17 = vsub.f32 %v501_v11, %v509_v16 }
 0x5d8   :  { %v506_v18 = vpop.xlane.xlu0 %505 }
 0x5d9   :  { %v514_v19 = vmul.f32 1.442695, %v511_v17  ;;  %v510_v20 = vsub.f32 %v496_v13, %v506_v18 }
 0x5da   :  { %v527_v29 = vpop.permute.xlu1 %526 }
 0x5db   :  { %3903 = vpow2.f32 %v514_v19  ;;  %v512_v21 = vmul.f32 1.442695, %v510_v20  ;;  %v211_v20 = vld [vmem:[%s4628_s6 + $0x10] sm:$0xff] }
 0x5dd   :  { %3905 = vpow2.f32 %v512_v21 }
 0x5de   :  { %v782_v39 = vpop.permute.xlu1 %781 }
 0x5e2   :  { %v780_v44 = vpop.permute.xlu1 %779 }
 0x5e6   :  { %v778_v47 = vpop.permute.xlu1 %777 }
 0x5e8   :  { %v3904_v22 = vpop.eup %3903 }
 0x5e9   :  { %v519_v23 = vsel %vm303_vm2, %v3904_v22, 0.0 }
 0x5ea   :  { %v3906_v24 = vpop.eup %3905  ;;  %520 = vadd.xlane.f32.xlu0 %v519_v23  ;;  %v1063_v49 = vpop.permute.xlu1 %1062 }
 0x5eb   :  { %v516_v25 = vsel %vm303_vm2, %v3906_v24, 0.0 }
 0x5ee   :  { %517 = vadd.xlane.f32.xlu0 %v516_v25  ;;  %v1061_v50 = vpop.permute.xlu1 %1060 }
 0x604   :  { %528 = vrot.lane.b32.xlu0 %v4144_v36, %s3991_s2 }
 0x608   :  { %775 = vrot.lane.b32.xlu0 %v4146_v38, %s4654_s3 }
 0x60c   :  { %1064 = vrot.lane.b32.xlu0 %v4144_v36, %s4652_s5 }
 0x610   :  { %1058 = vrot.lane.b32.xlu0 %v4146_v38, %s4650_s29 }
 0x673   :  { %v521_v26 = vpop.xlane.xlu0 %520 }
 0x674   :  { %3907 = vrcp.f32 %v521_v26 }
 0x677   :  { %v518_v27 = vpop.xlane.xlu0 %517 }
 0x678   :  { %3909 = vrcp.f32 %v518_v27 }
 0x67b   :  { %v529_v28 = vpop.permute.xlu0 %528 }
 0x67c   :  { %3654 = vmatprep.subr.mxu0 %v529_v28 }
 0x67d   :  { %3655 = vmatpush3.msra.mxu0 %v529_v28 }
 0x67e   :  { %3656 = vmatprep.subr.mxu0 %v527_v29 }
 0x67f   :  { %3657 = vmatpush3.msra.mxu0 %v527_v29  ;;  %v776_v40 = vpop.permute.xlu0 %775 }
 0x680   :  { %3661 = vmatprep.subr.mxu0 %v210_v30 }
 0x681   :  { %v3908_v32 = vpop.eup %3907 }
 0x682   :  { %v525_v37 = vmul.f32 %v3908_v32, %v3904_v22  ;;  %v3670_v32 = vpop.f32.mrf.mxu1 }
 0x683   :  { %v1065_v46 = vpop.permute.xlu0 %1064 }
 0x685   :  { %v3910_v34 = vpop.eup %3909 }
 0x686   :  { %v524_v35 = vmul.f32 %v3910_v34, %v3906_v24  ;;  %v766_v34 = vpop.f32.mrf.mxu1 }
 0x687   :  { %v1059_v48 = vpop.permute.xlu0 %1058 }
 0x688   :  { %3658 = vmatprep.mubr.msk.f32.mxu0 %vm303_vm2, %v524_v35 }
 0x689   :  { %3659 = vmatmul.mubr.msk.f32.vlgmr.msra.gmra.mxu0 %vm303_vm2, %v525_v37 }
 0x68a   :  { %3662 = vmatpush3.msra.mxu0 %v210_v30 }
 0x68b   :  { %3671 = vmatprep.subr.msk.mxu0 %vm219_vm1, %v782_v39 }
 0x749   :  { %v3660_v42 = vpop.f32.mrf.mxu0 }
 0x74b   :  { %v604_v45 = vpop.f32.mrf.mxu0 }
 0x74c   :  { %3663 = vmatprep.mubr.msk.f32.mxu0 %vm219_vm1, %v604_v45 }
 0x74d   :  { %3664 = vmatmul.mubr.msk.f32.vlgmr.msra.gmra.mxu0 %vm219_vm1, %v3660_v42 }
 0x74e   :  { %3672 = vmatpush3.xpose.msk.msra.mxu0 %vm219_vm1, %v782_v39  ;;  %3675 = vmatprep.mubr.msk.f32.mxu0 %vm219_vm1, %v776_v40 }
 0x74f   :  { %3673 = vmatprep.subr.msk.mxu0 %vm219_vm1, %v780_v44 }
 0x752   :  { %3674 = vmatpush3.xpose.msk.msra.mxu0 %vm219_vm1, %v780_v44 }
 0x753   :  { %3690 = vmatprep.subr.msk.mxu0 %vm219_vm1, %v1065_v46 }
 0x755   :  { %3676 = vmatmul.mubr.msk.f32.vlgmr.msra.gmra.mxu0 %vm219_vm1, %v778_v47 }
 0x756   :  { %3691 = vmatpush3.xpose.msk.msra.mxu0 %vm219_vm1, %v1065_v46  ;;  %3694 = vmatprep.mubr.msk.f32.mxu0 %vm219_vm1, %v1059_v48  ;;  %v212_v46 = vld [vmem:[%s4628_s6 + $0x18] sm:$0xff] }
 0x757   :  { %3692 = vmatprep.subr.msk.mxu0 %vm219_vm1, %v1063_v49 }
 0x75a   :  { %3693 = vmatpush3.xpose.msk.msra.mxu0 %vm219_vm1, %v1063_v49 }
 0x75d   :  { %3695 = vmatmul.mubr.msk.f32.vlgmr.msra.gmra.mxu0 %vm219_vm1, %v1061_v50 }
 0x80d   :  { %v4246_v51 = vpop.f32.mrf.mxu0 }
 0x80e   :  { %v772_v47 = vadd.f32 %v3670_v32, %v4246_v51  ;;  %v1503_v32 = vld [vmem:[%s4633_s12 + $0x28] sm:$0xff] }
 0x80f   :  { %v4248_v52 = vpop.f32.mrf.mxu0 }
 0x810   :  { %v767_v49 = vadd.f32 %v766_v34, %v4248_v52  ;;  %v1502_v34 = vld [vmem:[%s4633_s12 + $0x20] sm:$0xff] }
 0x815   :  { %v3677_v53 = vpop.f32.mrf.mxu0 }
 0x816   :  { %v863_v54 = vadd.f32 %v3677_v53, %v4163_v41 }
 0x817   :  { %v857_v55 = vpop.f32.mrf.mxu0 }
 0x818   :  { %v858_v56 = vadd.f32 %v857_v55, %v4168_v43  ;;  %v869_v57 = vsel %vm303_vm2, %v863_v54, -inf }
 0x819   :  { %870 = vmax.xlane.f32.xlu1 %v869_v57 }
 0x81a   :  { %v866_v58 = vsel %vm303_vm2, %v858_v56, -inf }
 0x81b   :  { %867 = vmax.xlane.f32.xlu0 %v866_v58  ;;  %v3391_v58 = vld [vmem:[%s4629_s7] ss:$0 sm:$0xff] }
 0x81d   :  { %v3696_v59 = vpop.f32.mrf.mxu0 }
 0x81e   :  { %v1146_v13 = vadd.f32 %v3696_v59, %v4163_v41 }
 0x81f   :  { %v1140_v60 = vpop.f32.mrf.mxu0 }
 0x820   :  { %v1141_v61 = vadd.f32 %v1140_v60, %v4168_v43  ;;  %v1152_v14 = vsel %vm303_vm2, %v1146_v13, -inf }
 0x822   :  { %v1149_v62 = vsel %vm303_vm2, %v1141_v61, -inf }
 0x82a   :  { %888 = vrot.lane.b32.xlu1 %v4146_v38, %s4648_s23 }
 0x84e   :  { %1150 = vmax.xlane.f32.xlu1 %v1149_v62 }
 0x8a2   :  { %v871_v63 = vpop.xlane.xlu1 %870 }
 0x8a3   :  { %v873_v0 = vsub.f32 %v863_v54, %v871_v63 }
 0x8a4   :  { %v868_v1 = vpop.xlane.xlu0 %867 }
 0x8a5   :  { %v876_v2 = vmul.f32 1.442695, %v873_v0  ;;  %v872_v3 = vsub.f32 %v858_v56, %v868_v1 }
 0x8a6   :  { %v889_v9 = vpop.permute.xlu1 %888 }
 0x8a7   :  { %3911 = vpow2.f32 %v876_v2  ;;  %v874_v4 = vmul.f32 1.442695, %v872_v3 }
 0x8a9   :  { %3913 = vpow2.f32 %v874_v4 }
 0x8b4   :  { %v3912_v5 = vpop.eup %3911 }
 0x8b5   :  { %v881_v6 = vsel %vm303_vm2, %v3912_v5, 0.0 }
 0x8b6   :  { %v3914_v7 = vpop.eup %3913  ;;  %882 = vadd.xlane.f32.xlu0 %v881_v6 }
 0x8b7   :  { %v878_v8 = vsel %vm303_vm2, %v3914_v7, 0.0 }
 0x8ba   :  { %879 = vadd.xlane.f32.xlu0 %v878_v8 }
 0x8d0   :  { %890 = vrot.lane.b32.xlu0 %v4144_v36, %s4648_s23 }
 0x8d7   :  { %v1151_v10 = vpop.xlane.xlu1 %1150 }
 0x8d8   :  { %v1155_v11 = vsub.f32 %v1141_v61, %v1151_v10 }
 0x8da   :  { %v1157_v12 = vmul.f32 1.442695, %v1155_v11  ;;  %v1398_v11 = vld [vmem:[%s4630_s10 + $0x10] sm:$0xff] }
 0x8dc   :  { %3915 = vpow2.f32 %v1157_v12  ;;  %v1397_v12 = vld [vmem:[%s4630_s10 + $0x8] sm:$0xff] }
 0x8e9   :  { %v3916_v15 = vpop.eup %3915 }
 0x8ea   :  { %v1161_v16 = vsel %vm303_vm2, %v3916_v15, 0.0 }
 0x8ef   :  { %1153 = vmax.xlane.f32.xlu0 %v1152_v14 }
 0x8f3   :  { %1162 = vadd.xlane.f32.xlu0 %v1161_v16 }
 0x909   :  { %1173 = vrot.lane.b32.xlu0 %v4144_v36, %s4646_s24 }
 0x93f   :  { %v883_v17 = vpop.xlane.xlu0 %882 }
 0x940   :  { %3917 = vrcp.f32 %v883_v17 }
 0x943   :  { %v880_v18 = vpop.xlane.xlu0 %879 }
 0x944   :  { %3919 = vrcp.f32 %v880_v18 }
 0x947   :  { %v891_v19 = vpop.permute.xlu0 %890 }
 0x948   :  { %3678 = vmatprep.subr.mxu1 %v891_v19 }
 0x949   :  { %3679 = vmatpush3.msra.mxu1 %v891_v19 }
 0x94a   :  { %3680 = vmatprep.subr.mxu1 %v889_v9 }
 0x94b   :  { %3681 = vmatpush3.msra.mxu1 %v889_v9 }
 0x94c   :  { %3685 = vmatprep.subr.mxu1 %v211_v20 }
 0x94d   :  { %v3918_v21 = vpop.eup %3917 }
 0x94e   :  { %v887_v24 = vmul.f32 %v3918_v21, %v3912_v5  ;;  %v3392_v21 = vld [vmem:[%s4631_s8] ss:$0 sm:$0xff] }
 0x951   :  { %v3920_v22 = vpop.eup %3919 }
 0x952   :  { %v886_v23 = vmul.f32 %v3920_v22, %v3914_v7 }
 0x954   :  { %3682 = vmatprep.mubr.msk.f32.mxu1 %vm303_vm2, %v886_v23 }
 0x955   :  { %3683 = vmatmul.mubr.msk.f32.vlgmr.msra.gmra.mxu1 %vm303_vm2, %v887_v24 }
 0x956   :  { %3686 = vmatpush3.msra.mxu1 %v211_v20 }
 0x978   :  { %v1154_v36 = vpop.xlane.xlu0 %1153 }
 0x979   :  { %v1156_v25 = vsub.f32 %v1146_v13, %v1154_v36  ;;  %v1396_v13 = vld [vmem:[%s4630_s10] sm:$0xff] }
 0x97b   :  { %v1159_v26 = vmul.f32 1.442695, %v1156_v25  ;;  %v3393_v25 = vld [vmem:[%s4632_s9] ss:$0 sm:$0xff] }
 0x97c   :  { %v1163_v27 = vpop.xlane.xlu0 %1162 }
 0x97d   :  { %3921 = vpow2.f32 %v1159_v26 }
 0x97e   :  { %3923 = vrcp.f32 %v1163_v27 }
 0x980   :  { %v1174_v28 = vpop.permute.xlu0 %1173 }
 0x981   :  { %3697 = vmatprep.subr.mxu1 %v1174_v28 }
 0x98a   :  { %v3922_v29 = vpop.eup %3921 }
 0x98b   :  { %v1164_v30 = vsel %vm303_vm2, %v3922_v29, 0.0  ;;  %v3924_v35 = vpop.eup %3923 }
 0x98c   :  { %1165 = vadd.xlane.f32.xlu1 %v1164_v30  ;;  %v1169_v42 = vmul.f32 %v3924_v35, %v3916_v15  ;;  %v1504_v30 = vld [vmem:[%s4633_s12 + $0x30] sm:$0xff]  ;;  %v1501_v35 = vld [vmem:[%s4633_s12 + $0x18] sm:$0xff] }
 0x99d   :  { %1171 = vrot.lane.b32.xlu1 %v4146_v38, %s4646_s24  ;;  %s4671_s24 = smov 104  }
 0xa15   :  { %v3684_v37 = vpop.f32.mrf.mxu1  ;;  %v1166_v39 = vpop.xlane.xlu1 %1165 }
 0xa16   :  { %3925 = vrcp.f32 %v1166_v39  ;;  %v1499_v39 = vld [vmem:[%s4633_s12 + $0x8] sm:$0xff] }
 0xa17   :  { %v966_v40 = vpop.f32.mrf.mxu1 }
 0xa18   :  { %3687 = vmatprep.mubr.msk.f32.mxu1 %vm219_vm1, %v966_v40  ;;  %v1498_v40 = vld [vmem:[%s4633_s12] sm:$0xff] }
 0xa19   :  { %3688 = vmatmul.mubr.msk.f32.vlgmr.msra.gmra.mxu1 %vm219_vm1, %v3684_v37  ;;  %v1172_v44 = vpop.permute.xlu1 %1171  ;;  %v1500_v37 = vld [vmem:[%s4633_s12 + $0x10] sm:$0xff] }
 0xa1a   :  { %3698 = vmatpush3.msra.mxu1 %v1174_v28  ;;  %3701 = vmatprep.mubr.msk.f32.mxu1 %vm303_vm2, %v1169_v42  ;;  %v3394_v42 = vld [vmem:[%s4634_s11] ss:$0 sm:$0xff] }
 0xa1b   :  { %3699 = vmatprep.subr.mxu1 %v1172_v44 }
 0xa1c   :  { %3700 = vmatpush3.msra.mxu1 %v1172_v44 }
 0xa1d   :  { %3704 = vmatprep.subr.mxu1 %v212_v46 }
 0xa23   :  { %v3926_v38 = vpop.eup %3925 }
 0xa24   :  { %v1170_v45 = vmul.f32 %v3926_v38, %v3922_v29  ;;  %v1505_v29 = vld [vmem:[%s4633_s12 + $0x38] sm:$0xff] }
 0xa26   :  { %3702 = vmatmul.mubr.msk.f32.vlgmr.msra.gmra.mxu1 %vm303_vm2, %v1170_v45 }
 0xa27   :  { %3705 = vmatpush3.msra.mxu1 %v212_v46 }
 0xa28   :  { %3720 = vmatprep.subr.mxu1 %v1505_v29 }
 0xad9   :  { %v3689_v48 = vpop.f32.mrf.mxu1 }
 0xada   :  { %v1057_v50 = vadd.f32 %v3689_v48, %v772_v47 }
 0xadb   :  { %v1047_v53 = vpop.f32.mrf.mxu1 }
 0xadc   :  { %v1056_v54 = vadd.f32 %v1047_v53, %v767_v49 }
 0xae6   :  { %v3703_v55 = vpop.f32.mrf.mxu1 }
 0xae8   :  { %v1249_v56 = vpop.f32.mrf.mxu1 }
 0xae9   :  { %3706 = vmatprep.mubr.msk.f32.mxu1 %vm219_vm1, %v1249_v56 }
 0xaea   :  { %3707 = vmatmul.mubr.msk.f32.vlgmr.msra.gmra.mxu1 %vm219_vm1, %v3703_v55 }
 0xaeb   :  { %3721 = vmatpush3.msra.mxu1 %v1505_v29  ;;  %v3407_v29 = vld [vmem:[%s4667_s27 + $0x1] ss:$0 sm:$0xff] }
 0xaec   :  { %3722 = vmatprep.subr.mxu1 %v1504_v30 }
 0xaed   :  { %3723 = vmatpush3.msra.mxu1 %v1504_v30 }
 0xaee   :  { %3724 = vmatprep.subr.mxu1 %v1503_v32 }
 0xaef   :  { %3725 = vmatpush3.msra.mxu1 %v1503_v32 }
 0xaf0   :  { %3726 = vmatprep.subr.mxu1 %v1502_v34 }
 0xaf1   :  { %3727 = vmatpush3.msra.mxu1 %v1502_v34 }
 0xaf2   :  { %3728 = vmatprep.subr.mxu1 %v1501_v35 }
 0xaf3   :  { %3729 = vmatpush3.msra.mxu1 %v1501_v35 }
 0xaf4   :  { %3730 = vmatprep.subr.mxu1 %v1500_v37 }
 0xaf5   :  { %3731 = vmatpush3.msra.mxu1 %v1500_v37 }
 0xaf6   :  { %3732 = vmatprep.subr.mxu1 %v1499_v39 }
 0xaf7   :  { %3733 = vmatpush3.msra.mxu1 %v1499_v39 }
 0xaf8   :  { %3734 = vmatprep.subr.mxu1 %v1498_v40 }
 0xaf9   :  { %3735 = vmatpush3.msra.mxu1 %v1498_v40 }
 0xbaa   :  { %v3708_v57 = vpop.f32.mrf.mxu1 }
 0xbab   :  { %v1340_v59 = vadd.f32 %v3708_v57, %v1057_v50 }
 0xbac   :  { %v1330_v60 = vpop.f32.mrf.mxu1 }
 0xbad   :  { %v1349_v51 = vadd.f32 %v3391_v58, %v1340_v59  ;;  %v1339_v61 = vadd.f32 %v1330_v60, %v1056_v54  ;;  %v3397_v59 = vld [vmem:[%s4635_s13] ss:$0 sm:$0xff] }
 0xbaf   :  { %v1348_v62 = vadd.f32 %v3391_v58, %v1339_v61  ;;  %v1351_v52 = vadd.f32 %v1349_v51, %v4137_v33 }
 0xbb1   :  { %v1357_v63 = vsel %vm71_vm0, %v1351_v52, 0.0  ;;  %v1350_v0 = vadd.f32 %v1348_v62, %v4133_v31  ;;  %v1399_v31 = vld [vmem:[%s4630_s10 + $0x18] sm:$0xff] }
 0xbb2   :  { %1358 = vadd.xlane.f32.xlu0 %v1357_v63  ;;  %3709 = vmatprep.subr.mxu0 %v1399_v31 }
 0xbb3   :  { %v1354_v1 = vsel %vm71_vm0, %v1350_v0, 0.0  ;;  %3710 = vmatpush3.msra.mxu0 %v1399_v31  ;;  %v3405_v31 = vld [vmem:[%s4664_s26 + $0x38] sm:$0xff] }
 0xbb4   :  { %1355 = vadd.xlane.f32.xlu1 %v1354_v1  ;;  %3711 = vmatprep.subr.mxu0 %v1398_v11 }
 0xbb5   :  { %3712 = vmatpush3.msra.mxu0 %v1398_v11  ;;  %v3404_v11 = vld [vmem:[%s4664_s26 + $0x30] sm:$0xff] }
 0xbb6   :  { %3713 = vmatprep.subr.mxu0 %v1397_v12 }
 0xbb7   :  { %3714 = vmatpush3.msra.mxu0 %v1397_v12  ;;  %v3403_v12 = vld [vmem:[%s4664_s26 + $0x28] sm:$0xff] }
 0xbb8   :  { %3715 = vmatprep.subr.mxu0 %v1396_v13 }
 0xbb9   :  { %3716 = vmatpush3.msra.mxu0 %v1396_v13  ;;  %v3402_v13 = vld [vmem:[%s4664_s26 + $0x20] sm:$0xff] }
 0xbba   :  { %3739 = vmatprep.subr.mxu0 %v3405_v31 }
 0xc3b   :  { %v1359_v2 = vpop.xlane.xlu0 %1358 }
 0xc3c   :  { %v1361_v3 = vmul.f32 0.03125, %v1359_v2 }
 0xc3d   :  { %v1356_v4 = vpop.xlane.xlu1 %1355 }
 0xc3e   :  { %v1363_v5 = vsub.f32 %v1351_v52, %v1361_v3  ;;  %v1360_v6 = vmul.f32 0.03125, %v1356_v4 }
 0xc40   :  { %v1362_v7 = vsub.f32 %v1350_v0, %v1360_v6  ;;  %v1365_v8 = vmul.f32 %v1363_v5, %v1363_v5 }
 0xc42   :  { %v1369_v9 = vsel %vm71_vm0, %v1365_v8, 0.0  ;;  %v1364_v10 = vmul.f32 %v1362_v7, %v1362_v7 }
 0xc43   :  { %1370 = vadd.xlane.f32.xlu1 %v1369_v9 }
 0xc44   :  { %v1366_v33 = vsel %vm71_vm0, %v1364_v10, 0.0 }
 0xc45   :  { %1367 = vadd.xlane.f32.xlu0 %v1366_v33 }
 0xccc   :  { %v1371_v14 = vpop.xlane.xlu1 %1370 }
 0xccd   :  { %v1373_v15 = vmul.f32 0.03125, %v1371_v14 }
 0xcce   :  { %v1368_v16 = vpop.xlane.xlu0 %1367 }
 0xccf   :  { %v1375_v17 = vadd.f32 1e-12, %v1373_v15  ;;  %v1372_v18 = vmul.f32 0.03125, %v1368_v16 }
 0xcd1   :  { %3927 = vrsqrt.f32 %v1375_v17  ;;  %v1374_v19 = vadd.f32 1e-12, %v1372_v18 }
 0xcd3   :  { %3929 = vrsqrt.f32 %v1374_v19 }
 0xcde   :  { %v3928_v20 = vpop.eup %3927 }
 0xcdf   :  { %v1379_v22 = vmul.f32 %v3928_v20, %v1363_v5 }
 0xce0   :  { %v3930_v23 = vpop.eup %3929 }
 0xce1   :  { %v1378_v24 = vmul.f32 %v3930_v23, %v1362_v7  ;;  %v1387_v36 = vmul.f32 %v3392_v21, %v1379_v22 }
 0xce3   :  { %v1386_v26 = vmul.f32 %v3392_v21, %v1378_v24  ;;  %v1395_v28 = vadd.f32 %v3393_v25, %v1387_v36  ;;  %v3400_v21 = vld [vmem:[%s4636_s14] ss:$0 sm:$0xff] }
 0xce5   :  { %v1394_v27 = vadd.f32 %v3393_v25, %v1386_v26  ;;  %v3401_v25 = vld [vmem:[%s4637_s15] ss:$0 sm:$0xff] }
 0xce7   :  { %3717 = vmatprep.mubr.msk.f32.mxu0 %vm71_vm0, %v1394_v27 }
 0xce8   :  { %3718 = vmatmul.mubr.msk.f32.vlgmr.msra.gmra.mxu0 %vm71_vm0, %v1395_v28 }
 0xce9   :  { %3740 = vmatpush3.msra.mxu0 %v3405_v31 }
 0xcea   :  { %3741 = vmatprep.subr.mxu0 %v3404_v11 }
 0xceb   :  { %3742 = vmatpush3.msra.mxu0 %v3404_v11 }
 0xcec   :  { %3743 = vmatprep.subr.mxu0 %v3403_v12 }
 0xced   :  { %3744 = vmatpush3.msra.mxu0 %v3403_v12 }
 0xcee   :  { %3745 = vmatprep.subr.mxu0 %v3402_v13 }
 0xcef   :  { %3746 = vmatpush3.msra.mxu0 %v3402_v13 }
 0xda8   :  { %v3719_v44 = vpop.f32.mrf.mxu0 }
 0xda9   :  { %v1485_v38 = vadd.f32 %v3719_v44, %v3394_v42 }
 0xdaa   :  { %v1479_v45 = vpop.f32.mrf.mxu0 }
 0xdab   :  { %v1491_v46 = vmul.f32 0.70710677, %v1485_v38  ;;  %v1480_v47 = vadd.f32 %v3394_v42, %v1479_v45  ;;  %v1489_v56 = vmul.f32 0.5, %v1485_v38 }
 0xdad   :  { %3931 = verf.f32 %v1491_v46  ;;  %v1490_v48 = vmul.f32 0.70710677, %v1480_v47  ;;  %v1488_v54 = vmul.f32 0.5, %v1480_v47 }
 0xdaf   :  { %3933 = verf.f32 %v1490_v48 }
 0xdba   :  { %v3932_v49 = vpop.eup %3931 }
 0xdbb   :  { %v1495_v53 = vadd.f32 1.0, %v3932_v49 }
 0xdbc   :  { %v3934_v50 = vpop.eup %3933 }
 0xdbd   :  { %v1494_v55 = vadd.f32 1.0, %v3934_v50  ;;  %v1497_v58 = vmul.f32 %v1495_v53, %v1489_v56 }
 0xdbf   :  { %v1496_v57 = vmul.f32 %v1494_v55, %v1488_v54 }
 0xdc1   :  { %3736 = vmatprep.mubr.msk.f32.mxu1 %vm1513_vm3, %v1496_v57 }
 0xdc2   :  { %3737 = vmatmul.mubr.msk.f32.vlgmr.msra.gmra.mxu1 %vm1513_vm3, %v1497_v58 }
 0xe82   :  { %v3738_v60 = vpop.f32.mrf.mxu1 }
 0xe83   :  { %v1592_v51 = vadd.f32 %v3738_v60, %v3397_v59 }
 0xe84   :  { %v1586_v61 = vpop.f32.mrf.mxu1 }
 0xe85   :  { %v1587_v62 = vadd.f32 %v3397_v59, %v1586_v61  ;;  %v1596_v52 = vadd.f32 %v1592_v51, %v1395_v28 }
 0xe87   :  { %v1602_v63 = vsel %vm71_vm0, %v1596_v52, 0.0  ;;  %v1595_v0 = vadd.f32 %v1587_v62, %v1394_v27 }
 0xe88   :  { %1603 = vadd.xlane.f32.xlu1 %v1602_v63 }
 0xe89   :  { %v1599_v1 = vsel %vm71_vm0, %v1595_v0, 0.0 }
 0xe8a   :  { %1600 = vadd.xlane.f32.xlu0 %v1599_v1 }
 0xf11   :  { %v1604_v2 = vpop.xlane.xlu1 %1603 }
 0xf12   :  { %v1606_v3 = vmul.f32 0.03125, %v1604_v2 }
 0xf13   :  { %v1601_v4 = vpop.xlane.xlu0 %1600 }
 0xf14   :  { %v1608_v5 = vsub.f32 %v1596_v52, %v1606_v3  ;;  %v1605_v6 = vmul.f32 0.03125, %v1601_v4 }
 0xf16   :  { %v1607_v7 = vsub.f32 %v1595_v0, %v1605_v6  ;;  %v1610_v8 = vmul.f32 %v1608_v5, %v1608_v5 }
 0xf18   :  { %v1614_v9 = vsel %vm71_vm0, %v1610_v8, 0.0  ;;  %v1609_v10 = vmul.f32 %v1607_v7, %v1607_v7 }
 0xf19   :  { %1615 = vadd.xlane.f32.xlu1 %v1614_v9 }
 0xf1a   :  { %v1611_v33 = vsel %vm71_vm0, %v1609_v10, 0.0 }
 0xf1b   :  { %1612 = vadd.xlane.f32.xlu0 %v1611_v33 }
 0xfa2   :  { %v1616_v14 = vpop.xlane.xlu1 %1615 }
 0xfa3   :  { %v1618_v15 = vmul.f32 0.03125, %v1616_v14 }
 0xfa4   :  { %v1613_v16 = vpop.xlane.xlu0 %1612 }
 0xfa5   :  { %v1620_v17 = vadd.f32 1e-12, %v1618_v15  ;;  %v1617_v18 = vmul.f32 0.03125, %v1613_v16 }
 0xfa7   :  { %3935 = vrsqrt.f32 %v1620_v17  ;;  %v1619_v19 = vadd.f32 1e-12, %v1617_v18 }
 0xfa9   :  { %3937 = vrsqrt.f32 %v1619_v19 }
 0xfb4   :  { %v3936_v20 = vpop.eup %3935 }
 0xfb5   :  { %v1624_v22 = vmul.f32 %v3936_v20, %v1608_v5  ;;  %v3410_v5 = vld [vmem:[%s4628_s6 + $0x20] sm:$0xff] }
 0xfb6   :  { %v3938_v23 = vpop.eup %3937 }
 0xfb7   :  { %v1623_v24 = vmul.f32 %v3938_v23, %v1607_v7  ;;  %v1632_v36 = vmul.f32 %v3400_v21, %v1624_v22 }
 0xfb9   :  { %v1631_v26 = vmul.f32 %v3400_v21, %v1623_v24  ;;  %v4371_v28 = vadd.f32 %v3401_v25, %v1632_v36  ;;  %v3411_v24 = vld [vmem:[%s4628_s6 + $0x28] sm:$0xff] }
 0xfbb   :  { %v4369_v27 = vadd.f32 %v3401_v25, %v1631_v26 }
 0xfbd   :  { %3747 = vmatprep.mubr.msk.f32.mxu0 %vm71_vm0, %v4369_v27 }
 0xfbe   :  { %3748 = vmatmul.mubr.msk.f32.vlgmr.msra.gmra.mxu0 %vm71_vm0, %v4371_v28 }
0x107e   :  { %v3749_v30 = vpop.f32.mrf.mxu0 }
0x107f   :  { %v4380_v32 = vadd.f32 %v3749_v30, %v3407_v29 }
0x1080   :  { %v1726_v34 = vpop.f32.mrf.mxu0 }
0x1081   :  { %v4382_v35 = vadd.f32 %v3407_v29, %v1726_v34  ;;  %1744 = vrot.lane.b32.xlu0 %v4380_v32, %s3987_s28 }
0x1083   :  { %1742 = vrot.lane.b32.xlu1 %v4382_v35, %s3987_s28  ;;  %3754 = vmatprep.mubr.msk.f32.mxu0 %vm219_vm1, %v4382_v35 }
0x10f3   :  { %v1745_v37 = vpop.permute.xlu0 %1744 }
0x10f4   :  { %3750 = vmatprep.subr.msk.mxu0 %vm219_vm1, %v1745_v37 }
0x10f5   :  { %3751 = vmatpush3.xpose.msk.msra.mxu0 %vm219_vm1, %v1745_v37  ;;  %v1743_v39 = vpop.permute.xlu1 %1742 }
0x10f6   :  { %3752 = vmatprep.subr.msk.mxu0 %vm219_vm1, %v1743_v39 }
0x10f9   :  { %3753 = vmatpush3.xpose.msk.msra.mxu0 %vm219_vm1, %v1743_v39 }
0x10fc   :  { %3755 = vmatmul.mubr.msk.f32.vlgmr.msra.gmra.mxu0 %vm219_vm1, %v4380_v32 }
0x11bc   :  { %v3756_v40 = vpop.f32.mrf.mxu0 }
0x11bd   :  { %v1826_v42 = vadd.f32 %v3756_v40, %v4163_v41 }
0x11be   :  { %v1820_v44 = vpop.f32.mrf.mxu0 }
0x11bf   :  { %v1821_v38 = vadd.f32 %v1820_v44, %v4168_v43  ;;  %v1832_v45 = vsel %vm303_vm2, %v1826_v42, -inf }
0x11c0   :  { %1833 = vmax.xlane.f32.xlu0 %v1832_v45 }
0x11c1   :  { %v1829_v46 = vsel %vm303_vm2, %v1821_v38, -inf }
0x11c2   :  { %1830 = vmax.xlane.f32.xlu1 %v1829_v46 }
0x1249   :  { %v1834_v47 = vpop.xlane.xlu0 %1833 }
0x124a   :  { %v1836_v48 = vsub.f32 %v1826_v42, %v1834_v47 }
0x124b   :  { %v1831_v49 = vpop.xlane.xlu1 %1830 }
0x124c   :  { %v1839_v50 = vmul.f32 1.442695, %v1836_v48  ;;  %v1835_v53 = vsub.f32 %v1821_v38, %v1831_v49 }
0x124e   :  { %3939 = vpow2.f32 %v1839_v50  ;;  %v1837_v54 = vmul.f32 1.442695, %v1835_v53  ;;  %v3985_v50 = vld [vmem:[%s4627_s1 + $0x8] sm:$0xff] }
0x1250   :  { %3941 = vpow2.f32 %v1837_v54 }
0x125b   :  { %v3940_v55 = vpop.eup %3939 }
0x125c   :  { %v1844_v56 = vsel %vm303_vm2, %v3940_v55, 0.0 }
0x125d   :  { %v3942_v57 = vpop.eup %3941  ;;  %1845 = vadd.xlane.f32.xlu1 %v1844_v56 }
0x125e   :  { %v1841_v58 = vsel %vm303_vm2, %v3942_v57, 0.0 }
0x125f   :  { %1842 = vadd.xlane.f32.xlu0 %v1841_v58 }
0x126e   :  { %1851 = vrot.lane.b32.xlu1 %v4382_v35, %s3988_s21 }
0x1272   :  { %1944 = vrot.lane.b32.xlu1 %v4380_v32, %s3989_s4 }
0x1275   :  { %1853 = vrot.lane.b32.xlu0 %v4380_v32, %s3988_s21  ;;  %s4668_s21 = smov 80  }
0x1276   :  { %1942 = vrot.lane.b32.xlu1 %v4382_v35, %s3989_s4  ;;  %s4669_s4 = smov 112  }
0x1279   :  { %1938 = vrot.lane.b32.xlu0 %v4382_v35, %s3990_s22 }
0x127a   :  { %1940 = vrot.lane.b32.xlu1 %v4380_v32, %s3990_s22  ;;  %s4670_s22 = smov 72  }
0x12e6   :  { %v1846_v59 = vpop.xlane.xlu1 %1845 }
0x12e7   :  { %3943 = vrcp.f32 %v1846_v59 }
0x12e8   :  { %v1843_v60 = vpop.xlane.xlu0 %1842 }
0x12e9   :  { %3945 = vrcp.f32 %v1843_v60 }
0x12ea   :  { %v1852_v51 = vpop.permute.xlu1 %1851 }
0x12ec   :  { %v1854_v61 = vpop.permute.xlu0 %1853 }
0x12ed   :  { %3757 = vmatprep.subr.mxu1 %v1854_v61 }
0x12ee   :  { %3758 = vmatpush3.msra.mxu1 %v1854_v61  ;;  %v1945_v62 = vpop.permute.xlu1 %1944 }
0x12ef   :  { %3759 = vmatprep.subr.mxu1 %v1852_v51 }
0x12f0   :  { %3760 = vmatpush3.msra.mxu1 %v1852_v51  ;;  %v1939_v2 = vpop.permute.xlu0 %1938 }
0x12f1   :  { %3764 = vmatprep.subr.msk.mxu1 %vm219_vm1, %v1945_v62 }
0x12f2   :  { %v1943_v3 = vpop.permute.xlu1 %1942 }
0x12f4   :  { %v3944_v52 = vpop.eup %3943 }
0x12f5   :  { %v1850_v1 = vmul.f32 %v3944_v52, %v3940_v55  ;;  %v3986_v55 = vld [vmem:[%s4627_s1] sm:$0xff]  ;;  %s4673_s1 = smov 40  }
0x12f6   :  { %v3946_v63 = vpop.eup %3945  ;;  %v1941_v4 = vpop.permute.xlu1 %1940 }
0x12f7   :  { %v1849_v0 = vmul.f32 %v3946_v63, %v3942_v57 }
0x12f9   :  { %3761 = vmatprep.mubr.msk.f32.mxu1 %vm303_vm2, %v1849_v0 }
0x12fa   :  { %3762 = vmatmul.mubr.msk.f32.vlgmr.msra.gmra.mxu1 %vm303_vm2, %v1850_v1 }
0x12fb   :  { %3765 = vmatpush3.xpose.msk.msra.mxu1 %vm219_vm1, %v1945_v62  ;;  %3768 = vmatprep.mubr.msk.f32.mxu1 %vm219_vm1, %v1939_v2 }
0x12fc   :  { %3766 = vmatprep.subr.msk.mxu1 %vm219_vm1, %v1943_v3 }
0x12ff   :  { %3767 = vmatpush3.xpose.msk.msra.mxu1 %vm219_vm1, %v1943_v3 }
0x1300   :  { %3783 = vmatprep.subr.mxu1 %v3410_v5 }
0x1302   :  { %3769 = vmatmul.mubr.msk.f32.vlgmr.msra.gmra.mxu1 %vm219_vm1, %v1941_v4 }
0x1303   :  { %3784 = vmatpush3.msra.mxu1 %v3410_v5 }
0x13ba   :  { %v3763_v6 = vpop.f32.mrf.mxu1 }
0x13bc   :  { %v1929_v7 = vpop.f32.mrf.mxu1 }
0x13bd   :  { %3785 = vmatprep.mubr.msk.f32.mxu1 %vm219_vm1, %v1929_v7 }
0x13be   :  { %3786 = vmatmul.mubr.msk.f32.vlgmr.msra.gmra.mxu1 %vm219_vm1, %v3763_v6 }
0x13c2   :  { %v3770_v8 = vpop.f32.mrf.mxu1 }
0x13c3   :  { %v2026_v9 = vadd.f32 %v3770_v8, %v4163_v41 }
0x13c4   :  { %v2020_v10 = vpop.f32.mrf.mxu1 }
0x13c5   :  { %v2021_v33 = vadd.f32 %v2020_v10, %v4168_v43  ;;  %v2032_v31 = vsel %vm303_vm2, %v2026_v9, -inf }
0x13c6   :  { %2033 = vmax.xlane.f32.xlu1 %v2032_v31 }
0x13c7   :  { %v2029_v11 = vsel %vm303_vm2, %v2021_v33, -inf }
0x13c8   :  { %2030 = vmax.xlane.f32.xlu0 %v2029_v11 }
0x13d7   :  { %2051 = vrot.lane.b32.xlu1 %v4382_v35, %s3991_s2 }
0x13db   :  { %2306 = vrot.lane.b32.xlu1 %v4380_v32, %s4668_s21 }
0x13df   :  { %2304 = vrot.lane.b32.xlu1 %v4382_v35, %s4668_s21 }
0x13e3   :  { %2302 = vrot.lane.b32.xlu1 %v4380_v32, %s4669_s4 }
0x13e7   :  { %2587 = vrot.lane.b32.xlu1 %v4382_v35, %s4670_s22 }
0x13eb   :  { %2585 = vrot.lane.b32.xlu1 %v4380_v32, %s4671_s24 }
0x144f   :  { %v2034_v41 = vpop.xlane.xlu1 %2033 }
0x1450   :  { %v2036_v43 = vsub.f32 %v2026_v9, %v2034_v41 }
0x1451   :  { %v2031_v12 = vpop.xlane.xlu0 %2030 }
0x1452   :  { %v2039_v13 = vmul.f32 1.442695, %v2036_v43  ;;  %v2035_v14 = vsub.f32 %v2021_v33, %v2031_v12 }
0x1453   :  { %v2052_v23 = vpop.permute.xlu1 %2051 }
0x1454   :  { %3947 = vpow2.f32 %v2039_v13  ;;  %v2037_v15 = vmul.f32 1.442695, %v2035_v14  ;;  %v3412_v14 = vld [vmem:[%s4628_s6 + $0x30] sm:$0xff] }
0x1456   :  { %3949 = vpow2.f32 %v2037_v15 }
0x1457   :  { %v2307_v30 = vpop.permute.xlu1 %2306 }
0x145b   :  { %v2305_v39 = vpop.permute.xlu1 %2304 }
0x145f   :  { %v2303_v44 = vpop.permute.xlu1 %2302 }
0x1461   :  { %v3948_v16 = vpop.eup %3947 }
0x1462   :  { %v2044_v17 = vsel %vm303_vm2, %v3948_v16, 0.0 }
0x1463   :  { %v3950_v18 = vpop.eup %3949  ;;  %2045 = vadd.xlane.f32.xlu0 %v2044_v17  ;;  %v2588_v45 = vpop.permute.xlu1 %2587 }
0x1464   :  { %v2041_v19 = vsel %vm303_vm2, %v3950_v18, 0.0 }
0x1467   :  { %2042 = vadd.xlane.f32.xlu0 %v2041_v19  ;;  %v2586_v46 = vpop.permute.xlu1 %2585 }
0x147d   :  { %2053 = vrot.lane.b32.xlu0 %v4380_v32, %s3991_s2 }
0x1481   :  { %2300 = vrot.lane.b32.xlu0 %v4382_v35, %s4669_s4 }
0x1485   :  { %2589 = vrot.lane.b32.xlu0 %v4380_v32, %s4670_s22 }
0x1489   :  { %2583 = vrot.lane.b32.xlu0 %v4382_v35, %s4671_s24 }
0x14ec   :  { %v2046_v20 = vpop.xlane.xlu0 %2045 }
0x14ed   :  { %3951 = vrcp.f32 %v2046_v20 }
0x14f0   :  { %v2043_v21 = vpop.xlane.xlu0 %2042 }
0x14f1   :  { %3953 = vrcp.f32 %v2043_v21 }
0x14f4   :  { %v2054_v22 = vpop.permute.xlu0 %2053 }
0x14f5   :  { %3771 = vmatprep.subr.mxu0 %v2054_v22 }
0x14f6   :  { %3772 = vmatpush3.msra.mxu0 %v2054_v22 }
0x14f7   :  { %3773 = vmatprep.subr.mxu0 %v2052_v23 }
0x14f8   :  { %3774 = vmatpush3.msra.mxu0 %v2052_v23  ;;  %v2301_v34 = vpop.permute.xlu0 %2300 }
0x14f9   :  { %3778 = vmatprep.subr.mxu0 %v3411_v24 }
0x14fa   :  { %v3952_v36 = vpop.eup %3951 }
0x14fb   :  { %v2050_v29 = vmul.f32 %v3952_v36, %v3948_v16  ;;  %v3787_v36 = vpop.f32.mrf.mxu1 }
0x14fc   :  { %v2590_v42 = vpop.permute.xlu0 %2589 }
0x14fe   :  { %v3954_v25 = vpop.eup %3953 }
0x14ff   :  { %v2049_v26 = vmul.f32 %v3954_v25, %v3950_v18  ;;  %v2291_v25 = vpop.f32.mrf.mxu1 }
0x1500   :  { %v2584_v38 = vpop.permute.xlu0 %2583 }
0x1501   :  { %3775 = vmatprep.mubr.msk.f32.mxu0 %vm303_vm2, %v2049_v26 }
0x1502   :  { %3776 = vmatmul.mubr.msk.f32.vlgmr.msra.gmra.mxu0 %vm303_vm2, %v2050_v29 }
0x1503   :  { %3779 = vmatpush3.msra.mxu0 %v3411_v24 }
0x1504   :  { %3788 = vmatprep.subr.msk.mxu0 %vm219_vm1, %v2307_v30 }
0x15c2   :  { %v3777_v37 = vpop.f32.mrf.mxu0 }
0x15c4   :  { %v2129_v40 = vpop.f32.mrf.mxu0 }
0x15c5   :  { %3780 = vmatprep.mubr.msk.f32.mxu0 %vm219_vm1, %v2129_v40 }
0x15c6   :  { %3781 = vmatmul.mubr.msk.f32.vlgmr.msra.gmra.mxu0 %vm219_vm1, %v3777_v37 }
0x15c7   :  { %3789 = vmatpush3.xpose.msk.msra.mxu0 %vm219_vm1, %v2307_v30  ;;  %3792 = vmatprep.mubr.msk.f32.mxu0 %vm219_vm1, %v2301_v34 }
0x15c8   :  { %3790 = vmatprep.subr.msk.mxu0 %vm219_vm1, %v2305_v39 }
0x15cb   :  { %3791 = vmatpush3.xpose.msk.msra.mxu0 %vm219_vm1, %v2305_v39 }
0x15cc   :  { %3807 = vmatprep.subr.msk.mxu0 %vm219_vm1, %v2590_v42 }
0x15ce   :  { %3793 = vmatmul.mubr.msk.f32.vlgmr.msra.gmra.mxu0 %vm219_vm1, %v2303_v44 }
0x15cf   :  { %3808 = vmatpush3.xpose.msk.msra.mxu0 %vm219_vm1, %v2590_v42  ;;  %3811 = vmatprep.mubr.msk.f32.mxu0 %vm219_vm1, %v2584_v38  ;;  %v3413_v42 = vld [vmem:[%s4628_s6 + $0x38] sm:$0xff] }
0x15d0   :  { %3809 = vmatprep.subr.msk.mxu0 %vm219_vm1, %v2588_v45 }
0x15d3   :  { %3810 = vmatpush3.xpose.msk.msra.mxu0 %vm219_vm1, %v2588_v45 }
0x15d6   :  { %3812 = vmatmul.mubr.msk.f32.vlgmr.msra.gmra.mxu0 %vm219_vm1, %v2586_v46 }
0x1686   :  { %v4472_v47 = vpop.f32.mrf.mxu0 }
0x1687   :  { %v2297_v44 = vadd.f32 %v3787_v36, %v4472_v47  ;;  %v3463_v36 = vld [vmem:[%s4633_s12 + $0x58] sm:$0xff] }
0x1688   :  { %v4474_v48 = vpop.f32.mrf.mxu0 }
0x1689   :  { %v2292_v45 = vadd.f32 %v2291_v25, %v4474_v48  ;;  %v3462_v25 = vld [vmem:[%s4633_s12 + $0x50] sm:$0xff] }
0x168e   :  { %v3794_v49 = vpop.f32.mrf.mxu0 }
0x168f   :  { %v2388_v53 = vadd.f32 %v3985_v50, %v3794_v49 }
0x1690   :  { %v2382_v54 = vpop.f32.mrf.mxu0 }
0x1691   :  { %v2383_v56 = vadd.f32 %v3986_v55, %v2382_v54  ;;  %v2394_v57 = vsel %vm303_vm2, %v2388_v53, -inf }
0x1692   :  { %2395 = vmax.xlane.f32.xlu1 %v2394_v57 }
0x1693   :  { %v2391_v58 = vsel %vm303_vm2, %v2383_v56, -inf }
0x1694   :  { %2392 = vmax.xlane.f32.xlu0 %v2391_v58 }
0x1696   :  { %v3813_v59 = vpop.f32.mrf.mxu0 }
0x1697   :  { %v2671_v33 = vadd.f32 %v3985_v50, %v3813_v59 }
0x1698   :  { %v2665_v60 = vpop.f32.mrf.mxu0 }
0x1699   :  { %v2666_v51 = vadd.f32 %v3986_v55, %v2665_v60  ;;  %v2677_v31 = vsel %vm303_vm2, %v2671_v33, -inf }
0x169b   :  { %v2674_v61 = vsel %vm303_vm2, %v2666_v51, -inf }
0x16a3   :  { %2413 = vrot.lane.b32.xlu1 %v4382_v35, %s4672_s25 }
0x16c7   :  { %2675 = vmax.xlane.f32.xlu1 %v2674_v61 }
0x171b   :  { %v2396_v62 = vpop.xlane.xlu1 %2395 }
0x171c   :  { %v2398_v52 = vsub.f32 %v2388_v53, %v2396_v62 }
0x171d   :  { %v2393_v63 = vpop.xlane.xlu0 %2392 }
0x171e   :  { %v2401_v0 = vmul.f32 1.442695, %v2398_v52  ;;  %v2397_v1 = vsub.f32 %v2383_v56, %v2393_v63  ;;  %v3447_v56 = vld [vmem:[%s4629_s7 + $0x1] ss:$0 sm:$0xff] }
0x171f   :  { %v2414_v7 = vpop.permute.xlu1 %2413 }
0x1720   :  { %3955 = vpow2.f32 %v2401_v0  ;;  %v2399_v2 = vmul.f32 1.442695, %v2397_v1 }
0x1722   :  { %3957 = vpow2.f32 %v2399_v2 }
0x172d   :  { %v3956_v3 = vpop.eup %3955 }
0x172e   :  { %v2406_v4 = vsel %vm303_vm2, %v3956_v3, 0.0 }
0x172f   :  { %v3958_v5 = vpop.eup %3957  ;;  %2407 = vadd.xlane.f32.xlu0 %v2406_v4 }
0x1730   :  { %v2403_v6 = vsel %vm303_vm2, %v3958_v5, 0.0 }
0x1733   :  { %2404 = vadd.xlane.f32.xlu0 %v2403_v6 }
0x1749   :  { %2415 = vrot.lane.b32.xlu0 %v4380_v32, %s4672_s25 }
0x1750   :  { %v2676_v8 = vpop.xlane.xlu1 %2675 }
0x1751   :  { %v2680_v9 = vsub.f32 %v2666_v51, %v2676_v8  ;;  %v3453_v8 = vld [vmem:[%s4630_s10 + $0x28] sm:$0xff] }
0x1753   :  { %v2682_v10 = vmul.f32 1.442695, %v2680_v9  ;;  %v3452_v9 = vld [vmem:[%s4630_s10 + $0x20] sm:$0xff] }
0x1755   :  { %3959 = vpow2.f32 %v2682_v10 }
0x1762   :  { %v3960_v11 = vpop.eup %3959 }
0x1763   :  { %v2686_v41 = vsel %vm303_vm2, %v3960_v11, 0.0 }
0x1768   :  { %2678 = vmax.xlane.f32.xlu0 %v2677_v31 }
0x176c   :  { %2687 = vadd.xlane.f32.xlu0 %v2686_v41 }
0x1782   :  { %2698 = vrot.lane.b32.xlu0 %v4380_v32, %s4673_s1 }
0x17b8   :  { %v2408_v43 = vpop.xlane.xlu0 %2407 }
0x17b9   :  { %3961 = vrcp.f32 %v2408_v43 }
0x17bc   :  { %v2405_v12 = vpop.xlane.xlu0 %2404 }
0x17bd   :  { %3963 = vrcp.f32 %v2405_v12 }
0x17c0   :  { %v2416_v13 = vpop.permute.xlu0 %2415 }
0x17c1   :  { %3795 = vmatprep.subr.mxu1 %v2416_v13 }
0x17c2   :  { %3796 = vmatpush3.msra.mxu1 %v2416_v13  ;;  %v3450_v13 = vld [vmem:[%s4631_s8 + $0x1] ss:$0 sm:$0xff] }
0x17c3   :  { %3797 = vmatprep.subr.mxu1 %v2414_v7 }
0x17c4   :  { %3798 = vmatpush3.msra.mxu1 %v2414_v7  ;;  %v3454_v7 = vld [vmem:[%s4630_s10 + $0x30] sm:$0xff] }
0x17c5   :  { %3802 = vmatprep.subr.mxu1 %v3412_v14 }
0x17c6   :  { %v3962_v15 = vpop.eup %3961 }
0x17c7   :  { %v2412_v18 = vmul.f32 %v3962_v15, %v3956_v3 }
0x17ca   :  { %v3964_v16 = vpop.eup %3963 }
0x17cb   :  { %v2411_v17 = vmul.f32 %v3964_v16, %v3958_v5 }
0x17cd   :  { %3799 = vmatprep.mubr.msk.f32.mxu1 %vm303_vm2, %v2411_v17 }
0x17ce   :  { %3800 = vmatmul.mubr.msk.f32.vlgmr.msra.gmra.mxu1 %vm303_vm2, %v2412_v18  ;;  %v3451_v18 = vld [vmem:[%s4632_s9 + $0x1] ss:$0 sm:$0xff] }
0x17cf   :  { %3803 = vmatpush3.msra.mxu1 %v3412_v14 }
0x17f1   :  { %v2679_v32 = vpop.xlane.xlu0 %2678 }
0x17f2   :  { %v2681_v19 = vsub.f32 %v2671_v33, %v2679_v32 }
0x17f4   :  { %v2684_v20 = vmul.f32 1.442695, %v2681_v19 }
0x17f5   :  { %v2688_v21 = vpop.xlane.xlu0 %2687 }
0x17f6   :  { %3965 = vpow2.f32 %v2684_v20 }
0x17f7   :  { %3967 = vrcp.f32 %v2688_v21  ;;  %v3467_v21 = vld [vmem:[%s4633_s12 + $0x78] sm:$0xff] }
0x17f9   :  { %v2699_v22 = vpop.permute.xlu0 %2698 }
0x17fa   :  { %3814 = vmatprep.subr.mxu1 %v2699_v22 }
0x1803   :  { %v3966_v23 = vpop.eup %3965 }
0x1804   :  { %v2689_v24 = vsel %vm303_vm2, %v3966_v23, 0.0  ;;  %v3968_v26 = vpop.eup %3967 }
0x1805   :  { %2690 = vadd.xlane.f32.xlu1 %v2689_v24  ;;  %v2694_v37 = vmul.f32 %v3968_v26, %v3960_v11  ;;  %v3464_v24 = vld [vmem:[%s4633_s12 + $0x60] sm:$0xff]  ;;  %v3461_v26 = vld [vmem:[%s4633_s12 + $0x48] sm:$0xff] }
0x1816   :  { %2696 = vrot.lane.b32.xlu1 %v4382_v35, %s4673_s1 }
0x188e   :  { %v3801_v29 = vpop.f32.mrf.mxu1  ;;  %v2691_v30 = vpop.xlane.xlu1 %2690 }
0x188f   :  { %3969 = vrcp.f32 %v2691_v30  ;;  %v3457_v30 = vld [vmem:[%s4634_s11 + $0x1] ss:$0 sm:$0xff] }
0x1890   :  { %v2491_v34 = vpop.f32.mrf.mxu1 }
0x1891   :  { %3804 = vmatprep.mubr.msk.f32.mxu1 %vm219_vm1, %v2491_v34 }
0x1892   :  { %3805 = vmatmul.mubr.msk.f32.vlgmr.msra.gmra.mxu1 %vm219_vm1, %v3801_v29  ;;  %v2697_v39 = vpop.permute.xlu1 %2696  ;;  %v3460_v29 = vld [vmem:[%s4633_s12 + $0x40] sm:$0xff] }
0x1893   :  { %3815 = vmatpush3.msra.mxu1 %v2699_v22  ;;  %3818 = vmatprep.mubr.msk.f32.mxu1 %vm303_vm2, %v2694_v37  ;;  %v3466_v22 = vld [vmem:[%s4633_s12 + $0x70] sm:$0xff] }
0x1894   :  { %3816 = vmatprep.subr.mxu1 %v2697_v39 }
0x1895   :  { %3817 = vmatpush3.msra.mxu1 %v2697_v39 }
0x1896   :  { %3821 = vmatprep.subr.mxu1 %v3413_v42 }
0x189c   :  { %v3970_v35 = vpop.eup %3969 }
0x189d   :  { %v2695_v40 = vmul.f32 %v3970_v35, %v3966_v23  ;;  %v3465_v23 = vld [vmem:[%s4633_s12 + $0x68] sm:$0xff] }
0x189f   :  { %3819 = vmatmul.mubr.msk.f32.vlgmr.msra.gmra.mxu1 %vm303_vm2, %v2695_v40 }
0x18a0   :  { %3822 = vmatpush3.msra.mxu1 %v3413_v42 }
0x18a1   :  { %3837 = vmatprep.subr.mxu1 %v3467_v21 }
0x1952   :  { %v3806_v38 = vpop.f32.mrf.mxu1 }
0x1953   :  { %v2582_v46 = vadd.f32 %v3806_v38, %v2297_v44 }
0x1954   :  { %v2572_v49 = vpop.f32.mrf.mxu1 }
0x1955   :  { %v2581_v50 = vadd.f32 %v2572_v49, %v2292_v45 }
0x195f   :  { %v3820_v53 = vpop.f32.mrf.mxu1 }
0x1961   :  { %v2774_v54 = vpop.f32.mrf.mxu1 }
0x1962   :  { %3823 = vmatprep.mubr.msk.f32.mxu1 %vm219_vm1, %v2774_v54 }
0x1963   :  { %3824 = vmatmul.mubr.msk.f32.vlgmr.msra.gmra.mxu1 %vm219_vm1, %v3820_v53 }
0x1964   :  { %3838 = vmatpush3.msra.mxu1 %v3467_v21 }
0x1965   :  { %3839 = vmatprep.subr.mxu1 %v3466_v22 }
0x1966   :  { %3840 = vmatpush3.msra.mxu1 %v3466_v22  ;;  %v3267_v22 = vld [vmem:[%s4639_s18 + $0x18] sm:$0xff] }
0x1967   :  { %3841 = vmatprep.subr.mxu1 %v3465_v23 }
0x1968   :  { %3842 = vmatpush3.msra.mxu1 %v3465_v23  ;;  %v3266_v23 = vld [vmem:[%s4639_s18 + $0x10] sm:$0xff] }
0x1969   :  { %3843 = vmatprep.subr.mxu1 %v3464_v24 }
0x196a   :  { %3844 = vmatpush3.msra.mxu1 %v3464_v24  ;;  %v3265_v24 = vld [vmem:[%s4639_s18 + $0x8] sm:$0xff] }
0x196b   :  { %3845 = vmatprep.subr.mxu1 %v3463_v36 }
0x196c   :  { %3846 = vmatpush3.msra.mxu1 %v3463_v36  ;;  %v3264_v36 = vld [vmem:[%s4639_s18] sm:$0xff] }
0x196d   :  { %3847 = vmatprep.subr.mxu1 %v3462_v25 }
0x196e   :  { %3848 = vmatpush3.msra.mxu1 %v3462_v25  ;;  %v25_v25 = vstv %s4640_s19 }
0x196f   :  { %3849 = vmatprep.subr.mxu1 %v3461_v26  ;;  %26 = vst [vmem:[#allocation2] sm:$0x1] %v25_v25 }
0x1970   :  { %3850 = vmatpush3.msra.mxu1 %v3461_v26  ;;  %v3476_v26 = vld [vmem:[%s4641_s17] ss:$0 sm:$0xff] }
0x1971   :  { %3851 = vmatprep.subr.mxu1 %v3460_v29 }
0x1972   :  { %3852 = vmatpush3.msra.mxu1 %v3460_v29 }
0x1a23   :  { %v3825_v55 = vpop.f32.mrf.mxu1 }
0x1a24   :  { %v2865_v57 = vadd.f32 %v3825_v55, %v2582_v46  ;;  %v3469_v55 = vld [vmem:[%s4635_s13 + $0x1] ss:$0 sm:$0xff] }
0x1a25   :  { %v2855_v58 = vpop.f32.mrf.mxu1 }
0x1a26   :  { %v2875_v47 = vadd.f32 %v3447_v56, %v2865_v57  ;;  %v2864_v59 = vadd.f32 %v2855_v58, %v2581_v50 }
0x1a28   :  { %v2874_v60 = vadd.f32 %v3447_v56, %v2864_v59  ;;  %v2877_v48 = vadd.f32 %v2875_v47, %v4371_v28 }
0x1a2a   :  { %v2885_v51 = vsel %vm71_vm0, %v2877_v48, 0.0  ;;  %v2876_v61 = vadd.f32 %v2874_v60, %v4369_v27  ;;  %v3455_v27 = vld [vmem:[%s4630_s10 + $0x38] sm:$0xff] }
0x1a2b   :  { %2886 = vadd.xlane.f32.xlu0 %v2885_v51  ;;  %3826 = vmatprep.subr.mxu0 %v3455_v27 }
0x1a2c   :  { %v2882_v62 = vsel %vm71_vm0, %v2876_v61, 0.0  ;;  %3827 = vmatpush3.msra.mxu0 %v3455_v27  ;;  %v3181_v27 = vld [vmem:[%s4638_s16 + $0x10] sm:$0xff] }
0x1a2d   :  { %2883 = vadd.xlane.f32.xlu1 %v2882_v62  ;;  %3828 = vmatprep.subr.mxu0 %v3454_v7 }
0x1a2e   :  { %3829 = vmatpush3.msra.mxu0 %v3454_v7  ;;  %v3180_v7 = vld [vmem:[%s4638_s16 + $0x8] sm:$0xff] }
0x1a2f   :  { %3830 = vmatprep.subr.mxu0 %v3453_v8 }
0x1a30   :  { %3831 = vmatpush3.msra.mxu0 %v3453_v8  ;;  %v3179_v8 = vld [vmem:[%s4638_s16] sm:$0xff] }
0x1a31   :  { %3832 = vmatprep.subr.mxu0 %v3452_v9 }
0x1a32   :  { %3833 = vmatpush3.msra.mxu0 %v3452_v9 }
0x1ab4   :  { %v2887_v52 = vpop.xlane.xlu0 %2886 }
0x1ab5   :  { %v2889_v63 = vmul.f32 0.03125, %v2887_v52 }
0x1ab6   :  { %v2884_v0 = vpop.xlane.xlu1 %2883 }
0x1ab7   :  { %v2891_v1 = vsub.f32 %v2877_v48, %v2889_v63  ;;  %v2888_v2 = vmul.f32 0.03125, %v2884_v0 }
0x1ab9   :  { %v2890_v3 = vsub.f32 %v2876_v61, %v2888_v2  ;;  %v2893_v4 = vmul.f32 %v2891_v1, %v2891_v1 }
0x1abb   :  { %v2897_v5 = vsel %vm71_vm0, %v2893_v4, 0.0  ;;  %v2892_v6 = vmul.f32 %v2890_v3, %v2890_v3 }
0x1abc   :  { %2898 = vadd.xlane.f32.xlu1 %v2897_v5 }
0x1abd   :  { %v2894_v28 = vsel %vm71_vm0, %v2892_v6, 0.0  ;;  %v3998_v6 = vmov 0.0  }
0x1abe   :  { %2895 = vadd.xlane.f32.xlu0 %v2894_v28  ;;  %3856 = vmatprep.subr.mxu0 %v3998_v6  ;;  %v3182_v28 = vld [vmem:[%s4638_s16 + $0x18] sm:$0xff] }
0x1b45   :  { %v2899_v10 = vpop.xlane.xlu1 %2898 }
0x1b46   :  { %v2901_v33 = vmul.f32 0.03125, %v2899_v10 }
0x1b47   :  { %v2896_v31 = vpop.xlane.xlu0 %2895 }
0x1b48   :  { %v2903_v11 = vadd.f32 1e-12, %v2901_v33  ;;  %v2900_v41 = vmul.f32 0.03125, %v2896_v31 }
0x1b4a   :  { %3971 = vrsqrt.f32 %v2903_v11  ;;  %v2902_v43 = vadd.f32 1e-12, %v2900_v41 }
0x1b4c   :  { %3973 = vrsqrt.f32 %v2902_v43 }
0x1b57   :  { %v3972_v12 = vpop.eup %3971 }
0x1b58   :  { %v2907_v14 = vmul.f32 %v3972_v12, %v2891_v1  ;;  %v3474_v12 = vld [vmem:[%s4636_s14 + $0x1] ss:$0 sm:$0xff] }
0x1b59   :  { %v3974_v15 = vpop.eup %3973 }
0x1b5a   :  { %v2906_v16 = vmul.f32 %v3974_v15, %v2890_v3  ;;  %v2915_v17 = vmul.f32 %v3450_v13, %v2907_v14  ;;  %v3475_v15 = vld [vmem:[%s4637_s15 + $0x1] ss:$0 sm:$0xff] }
0x1b5c   :  { %v2914_v32 = vmul.f32 %v3450_v13, %v2906_v16  ;;  %v2923_v20 = vadd.f32 %v3451_v18, %v2915_v17 }
0x1b5e   :  { %v2922_v19 = vadd.f32 %v3451_v18, %v2914_v32 }
0x1b60   :  { %3834 = vmatprep.mubr.msk.f32.mxu0 %vm71_vm0, %v2922_v19 }
0x1b61   :  { %3835 = vmatmul.mubr.msk.f32.vlgmr.msra.gmra.mxu0 %vm71_vm0, %v2923_v20 }
0x1b62   :  { %3864 = vmatprep.mubr.msk.f32.mxu0 %vm3999_vm4, %v3998_v6  ;;  %3857 = vmatpush3.msra.mxu0 %v3182_v28 }
0x1b63   :  { %3858 = vmatprep.subr.mxu0 %v3998_v6 }
0x1b64   :  { %3859 = vmatpush3.msra.mxu0 %v3181_v27 }
0x1b65   :  { %3860 = vmatprep.subr.mxu0 %v3998_v6 }
0x1b66   :  { %3861 = vmatpush3.msra.mxu0 %v3180_v7 }
0x1b67   :  { %3862 = vmatprep.subr.mxu0 %v3998_v6 }
0x1b68   :  { %3863 = vmatpush3.msra.mxu0 %v3179_v8 }
0x1b69   :  { %3867 = vmatprep.subr.mxu0 %v3998_v6 }
0x1c21   :  { %v3836_v34 = vpop.f32.mrf.mxu0 }
0x1c22   :  { %v3015_v37 = vadd.f32 %v3836_v34, %v3457_v30 }
0x1c23   :  { %v3009_v39 = vpop.f32.mrf.mxu0 }
0x1c24   :  { %v3021_v35 = vmul.f32 0.70710677, %v3015_v37  ;;  %v3010_v40 = vadd.f32 %v3457_v30, %v3009_v39  ;;  %v3019_v50 = vmul.f32 0.5, %v3015_v37  ;;  %v3478_v39 = vld [vmem:[#allocation2] ss:$0 sm:$0xff] }
0x1c26   :  { %3975 = verf.f32 %v3021_v35  ;;  %v3020_v42 = vmul.f32 0.70710677, %v3010_v40  ;;  %v3018_v46 = vmul.f32 0.5, %v3010_v40 }
0x1c28   :  { %3977 = verf.f32 %v3020_v42 }
0x1c33   :  { %v3976_v44 = vpop.eup %3975 }
0x1c34   :  { %v3025_v45 = vadd.f32 1.0, %v3976_v44 }
0x1c35   :  { %v3978_v38 = vpop.eup %3977 }
0x1c36   :  { %v3024_v49 = vadd.f32 1.0, %v3978_v38  ;;  %v3027_v54 = vmul.f32 %v3025_v45, %v3019_v50 }
0x1c38   :  { %v3026_v53 = vmul.f32 %v3024_v49, %v3018_v46 }
0x1c3a   :  { %3853 = vmatprep.mubr.msk.f32.mxu1 %vm1513_vm3, %v3026_v53 }
0x1c3b   :  { %3854 = vmatmul.mubr.msk.f32.vlgmr.msra.gmra.mxu1 %vm1513_vm3, %v3027_v54 }
0x1cfb   :  { %v3855_v56 = vpop.f32.mrf.mxu1 }
0x1cfc   :  { %v3123_v57 = vadd.f32 %v3855_v56, %v3469_v55 }
0x1cfd   :  { %v3117_v58 = vpop.f32.mrf.mxu1 }
0x1cfe   :  { %v3118_v47 = vadd.f32 %v3469_v55, %v3117_v58  ;;  %v3127_v59 = vadd.f32 %v3123_v57, %v2923_v20 }
0x1d00   :  { %v3135_v60 = vsel %vm71_vm0, %v3127_v59, 0.0  ;;  %v3126_v48 = vadd.f32 %v3118_v47, %v2922_v19 }
0x1d01   :  { %3136 = vadd.xlane.f32.xlu0 %v3135_v60 }
0x1d02   :  { %v3132_v51 = vsel %vm71_vm0, %v3126_v48, 0.0 }
0x1d03   :  { %3133 = vadd.xlane.f32.xlu1 %v3132_v51 }
0x1d8a   :  { %v3137_v61 = vpop.xlane.xlu0 %3136 }
0x1d8b   :  { %v3139_v62 = vmul.f32 0.03125, %v3137_v61 }
0x1d8c   :  { %v3134_v52 = vpop.xlane.xlu1 %3133 }
0x1d8d   :  { %v3141_v63 = vsub.f32 %v3127_v59, %v3139_v62  ;;  %v3138_v0 = vmul.f32 0.03125, %v3134_v52 }
0x1d8f   :  { %v3140_v1 = vsub.f32 %v3126_v48, %v3138_v0  ;;  %v3143_v2 = vmul.f32 %v3141_v63, %v3141_v63 }
0x1d91   :  { %v3147_v3 = vsel %vm71_vm0, %v3143_v2, 0.0  ;;  %v3142_v4 = vmul.f32 %v3140_v1, %v3140_v1 }
0x1d92   :  { %3148 = vadd.xlane.f32.xlu0 %v3147_v3 }
0x1d93   :  { %v3144_v5 = vsel %vm71_vm0, %v3142_v4, 0.0 }
0x1d94   :  { %3145 = vadd.xlane.f32.xlu1 %v3144_v5 }
0x1e1b   :  { %v3149_v9 = vpop.xlane.xlu0 %3148 }
0x1e1c   :  { %v3151_v10 = vmul.f32 0.03125, %v3149_v9 }
0x1e1d   :  { %v3146_v33 = vpop.xlane.xlu1 %3145 }
0x1e1e   :  { %v3153_v31 = vadd.f32 1e-12, %v3151_v10  ;;  %v3150_v11 = vmul.f32 0.03125, %v3146_v33 }
0x1e20   :  { %3979 = vrsqrt.f32 %v3153_v31  ;;  %v3152_v41 = vadd.f32 1e-12, %v3150_v11 }
0x1e22   :  { %3981 = vrsqrt.f32 %v3152_v41 }
0x1e2d   :  { %v3980_v43 = vpop.eup %3979 }
0x1e2e   :  { %v3157_v13 = vmul.f32 %v3980_v43, %v3141_v63 }
0x1e2f   :  { %v3982_v14 = vpop.eup %3981 }
0x1e30   :  { %v3156_v16 = vmul.f32 %v3982_v14, %v3140_v1  ;;  %v3165_v17 = vmul.f32 %v3474_v12, %v3157_v13 }
0x1e32   :  { %v3164_v18 = vmul.f32 %v3474_v12, %v3156_v16  ;;  %v3173_v32 = vadd.f32 %v3475_v15, %v3165_v17 }
0x1e34   :  { %v3172_v19 = vadd.f32 %v3475_v15, %v3164_v18  ;;  %v3175_v20 = vrot.slane %v3173_v32, 7 }
0x1e36   :  { %v3178_v21 = vsel %vm3177_vm5, %v3172_v19, %v3175_v20 }
0x1e37   :  { %3865 = vmatmul.mubr.msk.f32.vlgmr.msra.gmra.mxu0 %vm71_vm0, %v3178_v21 }
0x1e38   :  { %3875 = vmatprep.mubr.msk.f32.mxu0 %vm3999_vm4, %v3998_v6  ;;  %3868 = vmatpush3.msra.mxu0 %v3267_v22 }
0x1e39   :  { %3869 = vmatprep.subr.mxu0 %v3998_v6 }
0x1e3a   :  { %3870 = vmatpush3.msra.mxu0 %v3266_v23 }
0x1e3b   :  { %3871 = vmatprep.subr.mxu0 %v3998_v6 }
0x1e3c   :  { %3872 = vmatpush3.msra.mxu0 %v3265_v24 }
0x1e3d   :  { %3873 = vmatprep.subr.mxu0 %v3998_v6 }
0x1e3e   :  { %3874 = vmatpush3.msra.mxu0 %v3264_v36 }
0x1ef7   :  { %v3259_v29 = vpop.f32.mrf.mxu0 }
0x1ef8   :  { %v3260_v30 = vadd.f32 %v3476_v26, %v3259_v29 }
0x1ef9   :  { %v3866_v34 = vpop.f32.mrf.mxu0 }
0x1efa   :  { %3983 = vtanh.f32 %v3260_v30 }
0x1f07   :  { %v3984_v37 = vpop.eup %3983 }
0x1f08   :  { %3876 = vmatmul.mubr.msk.f32.vlgmr.msra.gmra.mxu0 %vm71_vm0, %v3984_v37 }
0x1fc8   :  { %v3344_v35 = vpop.f32.mrf.mxu0 }
0x1fc9   :  { %v3345_v40 = vadd.f32 %v3478_v39, %v3344_v35 }
0x1fca   :  { %v3877_v42 = vpop.f32.mrf.mxu0 }
0x1fcb   :  { %3349 = vst.msk [vmem:[%s4642_s20] sm:$0x3] %vm3348_vm6, %v3345_v40 }

</bundles_post_ra>
